<compile_context>
chip_gen: v7x
topology: tpu7x:2x2x1
jax: 0.10.0
libtpu: 0.0.40
codegen_flags: <defaults>
</compile_context>

<pallas_src>
import functools

import jax
import jax.numpy as jnp
from jax.experimental import pallas as pl
from jax.experimental.pallas import tpu as pltpu


def ff_kernel(x_ref, w1_ref, b1_ref, w2_ref, b2_ref, o_ref):
    # x_ref : (TN, D)       io dtype (f32 or bf16)   token tile
    # w1_ref: (1, m*D)      f32   depthwise scales, chunk-major flat index r*D + g
    # b1_ref: (1, m*D)      f32   depthwise biases, same layout
    # w2_ref: (m*D, Dpad)   mxu dtype (bf16 default), rows match the h layout
    # b2_ref: (1, Dpad)     f32   pointwise bias (zero-padded)
    # o_ref : (TN, Dpad)    io dtype
    D = x_ref.shape[1]
    m = w1_ref.shape[1] // D

    x = x_ref[...].astype(jnp.float32)
    # m lane-aligned copies of x -> (TN, m*D); one fused scale + bias + ReLU pass (VPU, f32).
    xx = jnp.concatenate([x] * m, axis=-1) if m > 1 else x
    h = jnp.maximum(xx * w1_ref[...] + b1_ref[...], 0.0)
    # Single MXU matmul with K = m*D (one weight load, one cast, f32 accumulation).
    acc = jnp.dot(h.astype(w2_ref.dtype), w2_ref[...],
                  preferred_element_type=jnp.float32)
    # Single epilogue pass: bias add + cast + lane-dense store.
    o_ref[...] = (acc + b2_ref[...]).astype(o_ref.dtype)


def prepare_params(dw_w, dw_b, pw_w, pw_b, *, mxu_dtype=jnp.bfloat16):
    """One-time parameter prep (hoisted out of the forward path).

    dw_w: (d_ff, 1, 1)       depthwise Conv1d weight (groups = d_model)
    dw_b: (d_ff,)            depthwise bias
    pw_w: (d_model, d_ff, 1) pointwise Conv1d weight
    pw_b: (d_model,)         pointwise bias
    mxu_dtype: dtype fed to the MXU dot (bf16 default; jnp.float32 for exact parity, e.g. v5e).
    """
    d_ff = dw_w.shape[0]
    d_model, d_ff2, _ = pw_w.shape
    assert d_ff == d_ff2
    assert d_ff % d_model == 0, "groups=d_model requires d_ff % d_model == 0"
    m = d_ff // d_model

    # Depthwise: output channel j = g*m + r reads input channel g.
    # Chunk-major flat layout: flat index r*d_model + g  <->  conv channel j = g*m + r.
    w1 = dw_w.reshape(d_model, m).T.reshape(1, m * d_model).astype(jnp.float32)
    b1 = dw_b.reshape(d_model, m).T.reshape(1, m * d_model).astype(jnp.float32)

    # Pointwise: W2[j, c] = pw_w[c, j, 0]; reorder rows to the same chunk-major layout so
    # the kernel's fused h @ W2 is a single K = m*d_model contraction.
    w2 = (pw_w.reshape(d_model, d_ff).T            # (d_ff, d_model)   [j, c]
              .reshape(d_model, m, d_model)        # [g, r, c]
              .transpose(1, 0, 2)                  # [r, g, c]
              .reshape(m * d_model, d_model))      # row index r*d_model + g
    b2 = pw_b.reshape(1, d_model).astype(jnp.float32)

    # Pad output channels to a multiple of 128: keeps stores lane-dense (no vst.msk).
    d_out = d_model
    pad_c = (-d_out) % 128
    if pad_c:
        w2 = jnp.pad(w2, ((0, 0), (0, pad_c)))
        b2 = jnp.pad(b2, ((0, 0), (0, pad_c)))
    return w1, b1, w2.astype(mxu_dtype), b2, d_out


def feed_forward(x, params, *, tile_n=512):
    """x: (B, S, d_model); params from prepare_params.  Returns (B, S, d_model) in x.dtype.

    Pass x in bf16 to halve HBM read/write traffic (compute stays f32 in-kernel).  Pick
    tile_n so B*S/tile_n leaves >= 2 grid steps per TensorCore (>= 4 total on v7x).
    """
    w1, b1, w2, b2, d_out = params
    B, S, D = x.shape
    mD = w1.shape[1]
    d_pad = w2.shape[1]
    assert tile_n % 8 == 0, "tile_n must be a multiple of 8"

    N = B * S
    x2 = x.reshape(N, D)
    pad_n = (-N) % tile_n                  # ragged token counts: pad, slice afterwards
    if pad_n:
        x2 = jnp.pad(x2, ((0, pad_n), (0, 0)))
    n_pad = N + pad_n

    out = pl.pallas_call(
        ff_kernel,
        out_shape=jax.ShapeDtypeStruct((n_pad, d_pad), x.dtype),
        grid_spec=pltpu.PrefetchScalarGridSpec(
            num_scalar_prefetch=0,
            grid=(n_pad // tile_n,),
            in_specs=[
                pl.BlockSpec((tile_n, D), lambda i: (i, 0)),      # x tile (pipelined)
                # Constant-index weight/bias tiles (grid-resident).  At production d_ff on
                # v7x, single-buffer these via pipeline_mode=pl.Buffered(1) for VMEM headroom.
                pl.BlockSpec((1, mD), lambda i: (0, 0)),          # depthwise scales
                pl.BlockSpec((1, mD), lambda i: (0, 0)),          # depthwise biases
                pl.BlockSpec((mD, d_pad), lambda i: (0, 0)),      # pointwise W2 (chunk-major)
                pl.BlockSpec((1, d_pad), lambda i: (0, 0)),       # pointwise bias
            ],
            out_specs=pl.BlockSpec((tile_n, d_pad), lambda i: (i, 0)),
        ),
        compiler_params=pltpu.CompilerParams(
            dimension_semantics=("parallel",),     # even grid split across v7x's 2 TCs
            vmem_limit_bytes=32 * 1024 * 1024,     # per-tile footprint ~2 MiB; ample headroom
        ),
    )(x2, w1, b1, w2, b2)

    out = out[:N, :d_out]
    return out.reshape(B, S, d_out)


def ref_forward(x, dw_w, dw_b, pw_w, pw_b):
    """Pure-JAX f32 reference matching the PyTorch semantics exactly (eval mode)."""
    B, S, D = x.shape
    d_ff = dw_w.shape[0]
    m = d_ff // D
    h = x[..., jnp.arange(d_ff) // m] * dw_w.reshape(d_ff) + dw_b
    h = jnp.maximum(h, 0.0)
    y = h @ pw_w.reshape(D, d_ff).T + pw_b
    return y


if __name__ == "__main__":
    # d_model = 128 keeps loads/stores lane-dense; N = B*S = 2048 tokens with tile_n = 512
    # -> 4 grid steps = 2 per v7x TensorCore (real pipeline overlap on both cores).
    B, S, d_model, d_ff = 4, 512, 128, 512     # m = d_ff // d_model = 4

    key = jax.random.PRNGKey(0)
    kx, k1, k2, k3, k4 = jax.random.split(key, 5)

    x = jax.random.normal(kx, (B, S, d_model), jnp.float32)
    # synthetic parameters with the nn.Module's conv weight shapes
    dw_w = jax.random.normal(k1, (d_ff, 1, 1), jnp.float32) * 0.5
    dw_b = jax.random.normal(k2, (d_ff,), jnp.float32) * 0.1
    pw_w = jax.random.normal(k3, (d_model, d_ff, 1), jnp.float32) * (1.0 / d_ff ** 0.5)
    pw_b = jax.random.normal(k4, (d_model,), jnp.float32) * 0.1

    params = prepare_params(dw_w, dw_b, pw_w, pw_b)     # one-time prep (bf16 MXU weights)
    ff = jax.jit(functools.partial(feed_forward, params=params, tile_n=512))

    y_ref = ref_forward(x, dw_w, dw_b, pw_w, pw_b)

    # f32 I/O path (bf16 MXU inputs, f32 accumulation).
    y32 = jax.block_until_ready(ff(x))
    assert y32.shape == (B, S, d_model) and y32.dtype == jnp.float32
    assert jnp.allclose(y32, y_ref, atol=2e-2, rtol=2e-2), "f32-I/O mismatch vs reference"

    # bf16 I/O path (halves HBM traffic; biggest lever for this memory-bound kernel).
    y16 = jax.block_until_ready(ff(x.astype(jnp.bfloat16)))
    assert y16.shape == (B, S, d_model) and y16.dtype == jnp.bfloat16
    assert jnp.allclose(y16.astype(jnp.float32), y_ref, atol=6e-2, rtol=6e-2), \
        "bf16-I/O mismatch vs reference"

    print("KERNEL_OK")
</pallas_src>

<mosaic_0001>
module attributes {stable_mosaic.version = 11 : i64} {
  func.func @ff_kernel(%arg0: i32, %arg1: memref<512x128xf32, #tpu.memory_space<vmem>>, %arg2: memref<1x512xf32, #tpu.memory_space<vmem>>, %arg3: memref<1x512xf32, #tpu.memory_space<vmem>>, %arg4: memref<512x128xbf16, #tpu.memory_space<vmem>>, %arg5: memref<1x128xf32, #tpu.memory_space<vmem>>, %arg6: memref<512x128xf32, #tpu.memory_space<vmem>>) attributes {dimension_semantics = [#tpu.dimension_semantics<parallel>], iteration_bounds = array<i64: 4>, scalar_prefetch = 0 : i64, scratch_operands = 0 : i64, tpu.core_type = #tpu.core_type<tc>, window_params = [{transform_indices = @transform_0, window_bounds = array<i64: 512, 128>}, {pipeline_mode = #tpu.pipeline_mode<synchronous>, transform_indices = @transform_1, window_bounds = array<i64: 1, 512>}, {pipeline_mode = #tpu.pipeline_mode<synchronous>, transform_indices = @transform_2, window_bounds = array<i64: 1, 512>}, {pipeline_mode = #tpu.pipeline_mode<synchronous>, transform_indices = @transform_3, window_bounds = array<i64: 512, 128>}, {pipeline_mode = #tpu.pipeline_mode<synchronous>, transform_indices = @transform_4, window_bounds = array<i64: 1, 128>}, {transform_indices = @transform_5, window_bounds = array<i64: 512, 128>}]} {
    %c0 = arith.constant 0 : index
    %c0_0 = arith.constant 0 : index
    %0 = vector.load %arg1[%c0, %c0_0] : memref<512x128xf32, #tpu.memory_space<vmem>>, vector<512x128xf32>
    %1 = tpu.concatenate %0, %0, %0, %0 in 1 : vector<512x128xf32>, vector<512x128xf32>, vector<512x128xf32>, vector<512x128xf32> -> vector<512x512xf32>
    %c0_1 = arith.constant 0 : index
    %c0_2 = arith.constant 0 : index
    %2 = vector.load %arg2[%c0_1, %c0_2] : memref<1x512xf32, #tpu.memory_space<vmem>>, vector<1x512xf32>
    %3 = vector.broadcast %2 : vector<1x512xf32> to vector<512x512xf32>
    %4 = arith.mulf %1, %3 : vector<512x512xf32>
    %c0_3 = arith.constant 0 : index
    %c0_4 = arith.constant 0 : index
    %5 = vector.load %arg3[%c0_3, %c0_4] : memref<1x512xf32, #tpu.memory_space<vmem>>, vector<1x512xf32>
    %6 = vector.broadcast %5 : vector<1x512xf32> to vector<512x512xf32>
    %7 = arith.addf %4, %6 : vector<512x512xf32>
    %cst = arith.constant 0.000000e+00 : f32
    %8 = vector.broadcast %cst : f32 to vector<512x512xf32>
    %9 = arith.maximumf %7, %8 : vector<512x512xf32>
    %10 = arith.truncf %9 : vector<512x512xf32> to vector<512x512xbf16>
    %c0_5 = arith.constant 0 : index
    %c0_6 = arith.constant 0 : index
    %11 = vector.load %arg4[%c0_5, %c0_6] : memref<512x128xbf16, #tpu.memory_space<vmem>>, vector<512x128xbf16>
    %cst_7 = arith.constant dense<0.000000e+00> : vector<512x128xf32>
    %12 = tpu.matmul %10, %11, %cst_7 {dimension_numbers = #tpu.dot_dimension_numbers<[1], [0], [0], [1], [0, 0, 1, 1], [], []>} : vector<512x512xbf16>, vector<512x128xbf16>, vector<512x128xf32> -> vector<512x128xf32>
    %c0_8 = arith.constant 0 : index
    %c0_9 = arith.constant 0 : index
    %13 = vector.load %arg5[%c0_8, %c0_9] : memref<1x128xf32, #tpu.memory_space<vmem>>, vector<1x128xf32>
    %14 = vector.broadcast %13 : vector<1x128xf32> to vector<512x128xf32>
    %15 = arith.addf %12, %14 : vector<512x128xf32>
    %c0_10 = arith.constant 0 : index
    %c0_11 = arith.constant 0 : index
    %16 = vector.load %arg6[%c0_10, %c0_11] : memref<512x128xf32, #tpu.memory_space<vmem>>, vector<512x128xf32>
    tpu.vector_store %arg6[%c0_10, %c0_11], %15 {strides = array<i32>} : memref<512x128xf32, #tpu.memory_space<vmem>>, vector<512x128xf32>,
    return
  }
  func.func @transform_0(%arg0: i32) -> (i32, i32) {
    %c0_i32 = arith.constant 0 : i32
    %c0_i32_0 = arith.constant 0 : i32
    return %arg0, %c0_i32 : i32, i32
  }
  func.func @transform_1(%arg0: i32) -> (i32, i32) {
    %c0_i32 = arith.constant 0 : i32
    %c0_i32_0 = arith.constant 0 : i32
    %c0_i32_1 = arith.constant 0 : i32
    return %c0_i32, %c0_i32_0 : i32, i32
  }
  func.func @transform_2(%arg0: i32) -> (i32, i32) {
    %c0_i32 = arith.constant 0 : i32
    %c0_i32_0 = arith.constant 0 : i32
    %c0_i32_1 = arith.constant 0 : i32
    return %c0_i32, %c0_i32_0 : i32, i32
  }
  func.func @transform_3(%arg0: i32) -> (i32, i32) {
    %c0_i32 = arith.constant 0 : i32
    %c0_i32_0 = arith.constant 0 : i32
    %c0_i32_1 = arith.constant 0 : i32
    return %c0_i32, %c0_i32_0 : i32, i32
  }
  func.func @transform_4(%arg0: i32) -> (i32, i32) {
    %c0_i32 = arith.constant 0 : i32
    %c0_i32_0 = arith.constant 0 : i32
    %c0_i32_1 = arith.constant 0 : i32
    return %c0_i32, %c0_i32_0 : i32, i32
  }
  func.func @transform_5(%arg0: i32) -> (i32, i32) {
    %c0_i32 = arith.constant 0 : i32
    %c0_i32_0 = arith.constant 0 : i32
    return %arg0, %c0_i32 : i32, i32
  }
}

</mosaic_0001>

<bundles_post_ra>
// kernel: feed_forward.1
= control target key start
LH: loop header
LB: loop body
LE: loop exit
PB: predicated region body
PF: predicated region fallthrough
CT: control target
= control target key end

     0   :  { %10 = vsyncpa [#allocation3], 0  ;;  %s3687_s0 = inlined_call_operand.hbm [shape: f32[2048,128], index: 0, kind: input, shape index: {}]   ;;  %s3688_s1 = inlined_call_operand.vmem [shape: f32[1,512], index: 1, kind: input, shape index: {}]   ;;  %s3689_s2 = inlined_call_operand.vmem [shape: f32[1,512], index: 2, kind: input, shape index: {}]   ;;  %s3690_s3 = inlined_call_operand.hbm [shape: bf16[512,128], index: 3, kind: input, shape index: {}]   ;;  %s3691_s4 = inlined_call_operand.vmem [shape: f32[1,128], index: 4, kind: input, shape index: {}]   ;;  %s3692_s5 = inlined_call_operand.hbm [shape: f32[2048,128], index: 5, kind: output, shape index: {}]  }
   0x1   :  { %12 = vsyncpa [#allocation3 + $0x1], 0 }
   0x2   :  { %13 = vsyncpa [#allocation6], 0 }
   0x3   :  { %14 = vsyncpa [#allocation4], 0 }
   0x4   :  { %16 = vsyncpa [#allocation4 + $0x1], 0  ;;  %s2713_s18 = smov 0   ;;  %s2715_s19 = smov 0  }
   0x5   :  { %s2717_s20 = smov 0   ;;  %s2719_s21 = smov 0  }
   0x6 LB: > { %s2734_s22 = sadd.s32 4294967295, %s2671_s21   ;;  %s2267_s23 = sadd.s32 4294967294, %s2671_s21   ;;  %s2671_s21 = sphi %s2719_s21, %s3711_s21   ;;  %s2667_s20 = sphi %s2717_s20, %s3710_s20   ;;  %s2663_s19 = sphi %s2715_s19, %s3709_s19   ;;  %s2659_s18 = sphi %s2713_s18, %s3708_s18  }
   0x7   : > { %p42_p0 = scmp.ne.s32.totalorder %s2663_s19, %s2659_s18  ;;  %p3693_p1 = scmp.eq.s32.totalorder %s2734_s22, 0 }
   0x8   : > { %p156_p3 = scmp.eq.s32.totalorder %s2267_s23, 3  ;;  %p2268_p5 = scmp.ge.s32.totalorder %s2671_s21, 1 }
   0x9   : > { %p2743_p4 = por %p3693_p1, %p42_p0  ;;  %p163_p7 = scmp.lt.s32.totalorder %s2671_s21, 5 }
   0xa   : > { %p2748_p6 = por %p156_p3, %p42_p0  ;;  %s2673_s27 = smov [#allocation5]  }
   0xb   : > { %s3696_s24 = scalar_select %p2743_p4, 1, 0 }
   0xc   : > { %s3697_s25 = scalar_select %p2748_p6, 1, 0 }
   0xd   : > { %p2753_p8 = pnand %p2268_p5, %p163_p7  ;;  %s181_s28 = sshll.u32 %s2673_s27, 4  ;;  %s182_s28 = int_to_ptr.vmem [resolvable:$true] %s181_s28 }
   0xe   : > { %s2766_s30 = sadd.s32 1, %s2671_s21   ;;  %s29_s6 = sadd.s32 1, %s2667_s20 }
   0xf   : > { %s3698_s26 = scalar_select %p2753_p8, 1, 0 }
  0x10   : > { %p2454_p9 = pneg %p2753_p8  ;;  %s26_s7 = ssub.s32 %s2671_s21, %s2766_s30 }
  0x11   : > { %s2543_s10 = scalar_lea.hbm %s3690_s3, 4096 }
  0x12   : > { %p2761_p10 = pnand %p2454_p9, %p3693_p1  ;;  %p2544_p11 = scmp.ne.s32.totalorder %s3690_s3, %s2543_s10 }
  0x13   : > { %p2550_p3 = scmp.lt.u32.totalorder %s2543_s10, %s3690_s3 }
  0x14   : > { %p2545_p12 = pneg %p2761_p10 }
  0x16   : > { %p2546_p13 = pnand %p2545_p12, %p2544_p11 }
  0x18   : > { %p2547_p0 = pneg %p2546_p13 }
  0x1a   : > { %p2552_p5 = pnand %p2550_p3, %p2547_p0 }
  0x1c   : > { %2555 = shalt.err (!%p2552_p5)
}
  0x1d   : > { %s2556_s15 = scalar_lea.vmem %s182_s28, 4096  ;;  %p2564_p2 = scmp.lt.s32.totalorder %s182_s28, %s182_s28 }
  0x1e   : > { %p2557_p7 = scmp.ne.s32.totalorder %s182_s28, %s2556_s15  ;;  %p2565_p6 = scmp.lt.s32.totalorder %s2556_s15, %s2556_s15 }
  0x20   : > { %p2559_p9 = pnand %p2557_p7, %p2545_p12  ;;  %p2566_p4 = por %p2565_p6, %p2564_p2 }
  0x22   : > { %p2560_p1 = pneg %p2559_p9 }
  0x24   : > { %p2567_p8 = pnand %p2566_p4, %p2560_p1 }
  0x26   : > { %2570 = shalt.err (!%p2567_p8)
}
  0x27   : > { %s2674_s16 = smov 64   ;;  %s2675_s17 = smov 4  }
  0x28   : > { %2457 = dma.hbm_to_vmem [thread:$0]  (!%p2761_p10), %s3690_s3, 4096, %s182_s28, [#allocation6], %s2674_s16, %s2674_s16, %s2675_s17  }
  0x29   : > { %p27_p11 = scmp.eq.s32.totalorder %s26_s7, 0  ;;  %p36_p2 = scmp.ne.s32.totalorder %s2667_s20, %s2663_s19 }
  0x2a   : > { %p37_p1 = scmp.eq.s32.totalorder %s2671_s21, 0  ;;  %p2467_p4 = scmp.lt.s32.totalorder %s2671_s21, 4 }
  0x2b   : > { %s2792_s8 = scalar_select %p27_p11, %s2667_s20, %s29_s6  }
  0x2c   : > { %p38_p6 = por %p37_p1, %p36_p2  ;;  %p3700_p8 = scmp.eq.s32.totalorder %s2734_s22, 3 }
  0x2d   : > { %s198_s10 = sand.u32 1, %s2667_s20   ;;  %s2316_s11 = sshll.u32 %s2671_s21, 13 }
  0x2e   : > { %p2796_p12 = por %p3700_p8, %p36_p2  ;;  %s2271_s12 = sshll.u32 %s198_s10, 9 }
  0x2f   : > { %s2805_s14 = scalar_lea.hbm %s3687_s0, %s2316_s11  ;;  %s202_s28 = scalar_lea.vmem [#allocation2], %s2271_s12 }
  0x30   : > { %s209_s6 = sshll.u32 %s202_s28, 4  ;;  %p2807_p10 = pnand %p2467_p4, %p38_p6  ;;  %s2811_s6 = int_to_ptr.vmem [resolvable:$true] %s209_s6 }
  0x31   : > { %s2813_s15 = scalar_lea.sflag [#allocation3], %s198_s10  ;;  %s2571_s16 = scalar_lea.hbm %s2805_s14, 8192 }
  0x32   : > { %p2572_p13 = scmp.ne.s32.totalorder %s2805_s14, %s2571_s16  ;;  %p2573_p0 = pneg %p2807_p10 }
  0x33   : > { %s2576_s27 = scalar_lea.hbm %s3687_s0, 32768  ;;  %p2577_p7 = scmp.lt.u32.totalorder %s2805_s14, %s3687_s0 }
  0x34   : > { %p2574_p3 = pnand %p2573_p0, %p2572_p13  ;;  %p2578_p9 = scmp.lt.u32.totalorder %s2576_s27, %s2571_s16 }
  0x35   : > { %p2580_p2 = scmp.lt.u32.totalorder %s2571_s16, %s2805_s14 }
  0x36   : > { %p2575_p5 = pneg %p2574_p3  ;;  %p2579_p11 = por %p2578_p9, %p2577_p7 }
  0x38   : > { %p2581_p1 = por %p2580_p2, %p2579_p11 }
  0x3a   : > { %p2582_p4 = pnand %p2581_p1, %p2575_p5 }
  0x3c   : > { %2585 = shalt.err (!%p2582_p4)
}
  0x3d   : > { %s2586_s10 = scalar_lea.vmem %s2811_s6, 8192  ;;  %s2676_s29 = smov [#allocation2]  }
  0x3e   : > { %p2587_p6 = scmp.ne.s32.totalorder %s2811_s6, %s2586_s10  ;;  %s2591_s13 = sshll.u32 %s2676_s29, 4  ;;  %s2592_s13 = int_to_ptr.vmem [resolvable:$false] %s2591_s13 }
  0x3f   : > { %s2593_s28 = scalar_lea.vmem %s2592_s13, 16384  ;;  %p2594_p3 = scmp.lt.s32.totalorder %s2811_s6, %s2592_s13 }
  0x40   : > { %p2589_p8 = pnand %p2587_p6, %p2573_p0  ;;  %p2595_p7 = scmp.lt.s32.totalorder %s2593_s28, %s2586_s10 }
  0x42   : > { %p2590_p13 = pneg %p2589_p8  ;;  %p2596_p9 = por %p2595_p7, %p2594_p3 }
  0x44   : > { %p2597_p11 = pnand %p2596_p9, %p2590_p13 }
  0x46   : > { %2600 = shalt.err (!%p2597_p11)
}
  0x47   : > { %s2677_s16 = smov 128   ;;  %s2678_s17 = smov 8  }
  0x48   : > { %2461 = dma.hbm_to_vmem [thread:$0]  (!%p2807_p10), %s2805_s14, 8192, %s2811_s6, %s2813_s15, %s2677_s16, %s2677_s16, %s2678_s17  }
  0x49   : > { %p3703_p0 = scmp.ne.s32.totalorder %s3698_s26, 0 }
  0x4a   : > { %s2844_s23 = sand.u32 (!%p3703_p0), 1, %s2663_s19   ;;  %p3704_p5 = scmp.ne.s32.totalorder (!%p3703_p0), %s3696_s24, 0 }
  0x4b   : > { %221 = sbr.rel (%p3703_p0) target bundleno = 632 (0x278), region = 40  ;;  %s2275_s27 = sshll.u32 (!%p3703_p0), %s2844_s23, 9 }
  0x4c   : > { %s224_s11 = scalar_lea.sflag (!%p3703_p0), [#allocation3], %s2844_s23  ;;  %s2850_s12 = scalar_lea.vmem (!%p3703_p0), [#allocation2], %s2275_s27 }
  0x52   : > { %2646 = dma.done.wait (%p3704_p5), %s224_s11, 8192  }
  0x53   : > { %2648 = vsyncadd (%p3704_p5), %s224_s11, 4294959104  ;;  %p3705_p10 = scmp.eq.s32.totalorder %s2734_s22, 0 }
  0x55   : > { %2650 = dma.done.wait (%p3705_p10), [#allocation6], 4096   ;;  %p3706_p2 = pmov %p3705_p10 }
  0x56   : > { %v2679_v0 = vmov 0   ;;  %v2510_v1 = vld [vmem:[#allocation5] sm:$0xff]   ;;  %v2512_v3 = vld [vmem:[#allocation5 + $0x8] sm:$0xff]   ;;  %v2514_v5 = vld [vmem:[#allocation5 + $0x10] sm:$0xff]   ;;  %v327_v13 = vlaneseq  ;;  %s3469_s10 = scalar_lea.vmem [#allocation7], %s2275_s27  ;;  %s2317_s28 = sshll.u32 %s2734_s22, 13 }
  0x57   : > { %2652 = vsyncadd (%p3706_p2), [#allocation6], 4294963200  ;;  %1528 = vmatprep.subr.bf16.mxu1 %v2679_v0  ;;  %1817 = vmatprep.subr.bf16.mxu0 %v2679_v0  ;;  %v2511_v2 = vld [vmem:[#allocation5 + $0x80] sm:$0xff]   ;;  %v2513_v4 = vld [vmem:[#allocation5 + $0x88] sm:$0xff]   ;;  %s2184_s16 = sshll.u32 %s3469_s10, 4  ;;  %s3640_s11 = scalar_lea.hbm %s3692_s5, %s2317_s28  ;;  %s3642_s16 = int_to_ptr.vmem [resolvable:$true] %s2184_s16 }
  0x58   : > { %1529 = vmatpush1.bf16.msra.mxu1 %v2510_v1  ;;  %1818 = vmatpush1.bf16.msra.mxu0 %v2511_v2  ;;  %v2515_v6 = vld [vmem:[#allocation5 + $0x90] sm:$0xff]   ;;  %v2516_v7 = vld [vmem:[#allocation5 + $0x18] sm:$0xff]   ;;  %v2518_v9 = vld [vmem:[#allocation5 + $0x20] sm:$0xff]   ;;  %v2874_v16 = vshrl.u32 %v327_v13, 7  ;;  %s2171_s22 = scalar_lea.sflag [#allocation4], %s2844_s23  ;;  %s2680_s24 = smov [#allocation7]  }
  0x59   : > { %1530 = vmatprep.subr.bf16.mxu1 %v2679_v0  ;;  %1819 = vmatprep.subr.bf16.mxu0 %v2679_v0  ;;  %v2517_v8 = vld [vmem:[#allocation5 + $0x98] sm:$0xff]   ;;  %v2519_v10 = vld [vmem:[#allocation5 + $0xa0] sm:$0xff]   ;;  %v2520_v11 = vld [vmem:[#allocation5 + $0x28] sm:$0xff]   ;;  %s2605_s26 = sshll.u32 %s2680_s24, 4  ;;  %s2606_s26 = int_to_ptr.vmem [resolvable:$false] %s2605_s26 }
  0x5a   : > { %v2521_v12 = vld [vmem:[#allocation5 + $0xa8] sm:$0xff]   ;;  %v2522_v14 = vld [vmem:[#allocation5 + $0x30] sm:$0xff]   ;;  %v2524_v17 = vld [vmem:[#allocation5 + $0x38] sm:$0xff]   ;;  %v333_v19 = vsub.s32 1, %v2874_v16  ;;  %v341_v20 = vsub.s32 3, %v2874_v16  ;;  %v329_v46 = vsub.s32 0, %v2874_v16  ;;  %p2608_p8 = scmp.lt.s32.totalorder %s3642_s16, %s2606_s26 }
  0x5b   : > { %v2523_v15 = vld [vmem:[#allocation5 + $0xb0] sm:$0xff]   ;;  %v2525_v18 = vld [vmem:[#allocation5 + $0xb8] sm:$0xff]   ;;  %v2526_v21 = vld [vmem:[#allocation5 + $0x40] sm:$0xff]   ;;  %v337_v48 = vsub.s32 2, %v2874_v16  ;;  %s2607_s14 = scalar_lea.vmem %s2606_s26, 16384 }
  0x5c   : > { %1531 = vmatpush1.bf16.msra.mxu1 %v2512_v3  ;;  %1820 = vmatpush1.bf16.msra.mxu0 %v2513_v4  ;;  %v2527_v22 = vld [vmem:[#allocation5 + $0xc0] sm:$0xff]   ;;  %v262_v24 = vld [vmem:[%s2850_s12 + $0x8] sm:$0xff]  ;;  %v2530_v40 = vld [vmem:[#allocation5 + $0x50] sm:$0xff]  }
  0x5d   : > { %1532 = vmatprep.subr.bf16.mxu1 %v2679_v0  ;;  %1821 = vmatprep.subr.bf16.mxu0 %v2679_v0  ;;  %v261_v23 = vld [vmem:[%s2850_s12] sm:$0xff]  ;;  %v2528_v29 = vld [vmem:[#allocation5 + $0x48] sm:$0xff]   ;;  %v2531_v42 = vld [vmem:[#allocation5 + $0xd0] sm:$0xff]  }
  0x5e   : > { %v325_v25 = vld [vmem:[%s3688_s1] sm:$0xf]  ;;  %v2529_v32 = vld [vmem:[#allocation5 + $0xc8] sm:$0xff]   ;;  %v2532_v50 = vld [vmem:[#allocation5 + $0x58] sm:$0xff]  }
  0x5f   : > { %v2887_v26 = vrot.slane %v325_v25, %v333_v19  ;;  %v603_v27 = vld [vmem:[%s3689_s2] sm:$0xf]  ;;  %v2892_v28 = vrot.slane %v325_v25, %v341_v20  ;;  %v2533_v52 = vld [vmem:[#allocation5 + $0xd8] sm:$0xff]   ;;  %v2913_v53 = vrot.slane %v325_v25, %v329_v46  ;;  %v2916_v54 = vrot.slane %v325_v25, %v337_v48  ;;  %v263_v56 = vld [vmem:[%s2850_s12 + $0x10] sm:$0xff] }
  0x60   : > { %1533 = vmatpush1.bf16.msra.mxu1 %v2514_v5  ;;  %1822 = vmatpush1.bf16.msra.mxu0 %v2515_v6  ;;  %v2894_v30 = vrot.slane %v603_v27, %v333_v19  ;;  %v2896_v31 = vrot.slane %v603_v27, %v341_v20  ;;  %v2534_v55 = vld [vmem:[#allocation5 + $0x60] sm:$0xff]   ;;  %v264_v57 = vld [vmem:[%s2850_s12 + $0x18] sm:$0xff]  ;;  %v2922_v60 = vrot.slane %v603_v27, %v329_v46  ;;  %v2536_v4 = vld [vmem:[#allocation5 + $0x68] sm:$0xff]  }
  0x61   : > { %1534 = vmatprep.subr.bf16.mxu1 %v2679_v0  ;;  %1823 = vmatprep.subr.bf16.mxu0 %v2679_v0  ;;  %v348_v33 = vmul.f32 %v2887_v26, %v261_v23  ;;  %v352_v34 = vmul.f32 %v2887_v26, %v262_v24  ;;  %v350_v35 = vmul.f32 %v2892_v28, %v261_v23  ;;  %v2535_v58 = vld [vmem:[#allocation5 + $0xe0] sm:$0xff]   ;;  %v266_v20 = vld [vmem:[%s2850_s12 + $0x28] sm:$0xff] }
  0x62   : > { %v354_v36 = vmul.f32 %v2892_v28, %v262_v24  ;;  %v347_v59 = vmul.f32 %v2913_v53, %v261_v23  ;;  %v351_v61 = vmul.f32 %v2913_v53, %v262_v24  ;;  %v349_v62 = vmul.f32 %v2916_v54, %v261_v23 }
  0x63   : > { %v626_v37 = vadd.f32 %v2894_v30, %v348_v33  ;;  %v630_v38 = vadd.f32 %v2894_v30, %v352_v34  ;;  %v628_v39 = vadd.f32 %v2896_v31, %v350_v35  ;;  %v2927_v63 = vrot.slane %v603_v27, %v337_v48 }
  0x64   : > { %1535 = vmatpush1.bf16.msra.mxu1 %v2516_v7  ;;  %1824 = vmatpush1.bf16.msra.mxu0 %v2517_v8  ;;  %v632_v41 = vadd.f32 %v2896_v31, %v354_v36  ;;  %v353_v1 = vmul.f32 %v2916_v54, %v262_v24  ;;  %v356_v2 = vmul.f32 %v2887_v26, %v263_v56  ;;  %v2537_v7 = vld [vmem:[#allocation5 + $0xe8] sm:$0xff]   ;;  %v2540_v36 = vld [vmem:[#allocation5 + $0x78] sm:$0xff]  }
  0x65   : > { %1536 = vmatprep.subr.bf16.mxu1 %v2679_v0  ;;  %1825 = vmatprep.subr.bf16.mxu0 %v2679_v0  ;;  %v882_v43 = vmax.f32 %v626_v37, 0.0  ;;  %v886_v44 = vmax.f32 %v630_v38, 0.0  ;;  %v884_v45 = vmax.f32 %v628_v39, 0.0  ;;  %v360_v3 = vmul.f32 %v2887_v26, %v264_v57 }
  0x66   : > { %v888_v47 = vmax.f32 %v632_v41, 0.0  ;;  %v358_v5 = vmul.f32 %v2892_v28, %v263_v56  ;;  %v362_v6 = vmul.f32 %v2892_v28, %v264_v57  ;;  %v625_v8 = vadd.f32 %v2922_v60, %v347_v59  ;;  %v2541_v41 = vld [vmem:[#allocation5 + $0xf8] sm:$0xff]  }
  0x67   : > { %v1138_v49 = vpack.c.bf16 %v886_v44, %v882_v43  ;;  %v638_v13 = vadd.f32 %v2894_v30, %v360_v3  ;;  %v359_v19 = vmul.f32 %v2913_v53, %v264_v57  ;;  %v357_v23 = vmul.f32 %v2916_v54, %v263_v56  ;;  %v268_v59 = vld [vmem:[%s2850_s12 + $0x38] sm:$0xff] }
  0x68   : > { %1537 = vmatpush1.bf16.msra.mxu1 %v2518_v9  ;;  %1826 = vmatpush1.bf16.msra.mxu0 %v2519_v10  ;;  %v1140_v51 = vpack.c.bf16 %v888_v47, %v884_v45  ;;  %v629_v9 = vadd.f32 %v2922_v60, %v351_v61  ;;  %v627_v10 = vadd.f32 %v2927_v63, %v349_v62 }
  0x69   : > { %1538 = vmatprep.subr.bf16.mxu1 %v2679_v0  ;;  %1827 = vmatprep.subr.bf16.mxu0 %v2679_v0  ;;  %v636_v16 = vadd.f32 %v2896_v31, %v358_v5  ;;  %v361_v27 = vmul.f32 %v2916_v54, %v264_v57  ;;  %v894_v34 = vmax.f32 %v638_v13, 0.0  ;;  %v368_v35 = vmul.f32 %v2887_v26, %v266_v20 }
  0x6a   : > { %1560 = vmatprep.mubr.bf16.mxu1 %v1138_v49  ;;  %1849 = vmatprep.mubr.bf16.mxu0 %v1140_v51  ;;  %v885_v24 = vmax.f32 %v629_v9, 0.0  ;;  %v883_v25 = vmax.f32 %v627_v10, 0.0  ;;  %v370_v44 = vmul.f32 %v2892_v28, %v266_v20  ;;  %v369_v5 = vmul.f32 %v2916_v54, %v266_v20 }
  0x6b   : > { %v892_v37 = vmax.f32 %v636_v16, 0.0  ;;  %v639_v45 = vadd.f32 %v2927_v63, %v361_v27  ;;  %v646_v48 = vadd.f32 %v2894_v30, %v368_v35  ;;  %v378_v9 = vmul.f32 %v2892_v28, %v268_v59 }
  0x6c   : > { %1539 = vmatpush1.bf16.msra.mxu1 %v2520_v11  ;;  %1828 = vmatpush1.bf16.msra.mxu0 %v2521_v12  ;;  %v631_v11 = vadd.f32 %v2927_v63, %v353_v1  ;;  %v634_v12 = vadd.f32 %v2894_v30, %v356_v2  ;;  %v367_v2 = vmul.f32 %v2913_v53, %v266_v20  ;;  %v269_v20 = vld [vmem:[%s2850_s12 + $0x40] sm:$0xff] }
  0x6d   : > { %1540 = vmatprep.subr.bf16.mxu1 %v2679_v0  ;;  %1829 = vmatprep.subr.bf16.mxu0 %v2679_v0  ;;  %v895_v61 = vmax.f32 %v639_v45, 0.0  ;;  %v902_v3 = vmax.f32 %v646_v48, 0.0  ;;  %v377_v35 = vmul.f32 %v2916_v54, %v268_v59 }
  0x6e   : > { %v890_v33 = vmax.f32 %v634_v12, 0.0 }
  0x70   : > { %1541 = vmatpush1.bf16.msra.mxu1 %v2522_v14  ;;  %1830 = vmatpush1.bf16.msra.mxu0 %v2523_v15  ;;  %v265_v14 = vld [vmem:[%s2850_s12 + $0x20] sm:$0xff]  ;;  %v2538_v15 = vld [vmem:[#allocation5 + $0x70] sm:$0xff]  }
  0x71   : > { %1542 = vmatprep.subr.bf16.mxu1 %v2679_v0  ;;  %1831 = vmatprep.subr.bf16.mxu0 %v2679_v0  ;;  %v366_v43 = vmul.f32 %v2892_v28, %v265_v14  ;;  %v363_v1 = vmul.f32 %v2913_v53, %v265_v14 }
  0x74   : > { %1543 = vmatpush1.bf16.msra.mxu1 %v2524_v17  ;;  %1832 = vmatpush1.bf16.msra.mxu0 %v2525_v18  ;;  %v640_v17 = vadd.f32 %v2896_v31, %v362_v6  ;;  %v355_v18 = vmul.f32 %v2913_v53, %v263_v56 }
  0x75   : > { %1544 = vmatprep.subr.bf16.mxu1 %v2679_v0  ;;  %1833 = vmatprep.subr.bf16.mxu0 %v2679_v0 }
  0x76   : > { %v896_v38 = vmax.f32 %v640_v17, 0.0  ;;  %v633_v39 = vadd.f32 %v2922_v60, %v355_v18  ;;  %v647_v18 = vadd.f32 %v2927_v63, %v369_v5  ;;  %v379_v5 = vmul.f32 %v2913_v53, %v269_v20 }
  0x78   : > { %1545 = vmatpush1.bf16.msra.mxu1 %v2526_v21  ;;  %1834 = vmatpush1.bf16.msra.mxu0 %v2527_v22  ;;  %v2539_v21 = vld [vmem:[#allocation5 + $0xf0] sm:$0xff]   ;;  %v881_v22 = vmax.f32 %v625_v8, 0.0  ;;  %v1144_v51 = vpack.c.bf16 %v896_v38, %v892_v37  ;;  %v903_v38 = vmax.f32 %v647_v18, 0.0  ;;  %v657_v18 = vadd.f32 %v2922_v60, %v379_v5 }
  0x79   : > { %1546 = vmatprep.subr.bf16.mxu1 %v2679_v0  ;;  %1835 = vmatprep.subr.bf16.mxu0 %v2679_v0 }
  0x7a   : > { %v1137_v47 = vpack.c.bf16 %v885_v24, %v881_v22 }
  0x7c   : > { %1547 = vmatpush1.bf16.msra.mxu1 %v2528_v29  ;;  %1836 = vmatpush1.bf16.msra.mxu0 %v2529_v32  ;;  %v364_v29 = vmul.f32 %v2887_v26, %v265_v14  ;;  %v887_v32 = vmax.f32 %v631_v11, 0.0 }
  0x7d   : > { %1548 = vmatprep.subr.bf16.mxu1 %v2679_v0  ;;  %1837 = vmatprep.subr.bf16.mxu0 %v2679_v0 }
  0x7e   : > { %v642_v46 = vadd.f32 %v2894_v30, %v364_v29  ;;  %v1139_v49 = vpack.c.bf16 %v887_v32, %v883_v25  ;;  %v270_v25 = vld [vmem:[%s2850_s12 + $0x48] sm:$0xff]  ;;  %v375_v29 = vmul.f32 %v2913_v53, %v268_v59 }
  0x7f   : > { %v386_v48 = vmul.f32 %v2892_v28, %v270_v25 }
  0x80   : > { %1549 = vmatpush1.bf16.msra.mxu1 %v2530_v40  ;;  %1838 = vmatpush1.bf16.msra.mxu0 %v2531_v42  ;;  %v637_v40 = vadd.f32 %v2922_v60, %v359_v19  ;;  %v635_v42 = vadd.f32 %v2927_v63, %v357_v23  ;;  %v898_v62 = vmax.f32 %v642_v46, 0.0  ;;  %v656_v23 = vadd.f32 %v2896_v31, %v378_v9 }
  0x81   : > { %1550 = vmatprep.subr.bf16.mxu1 %v2679_v0  ;;  %1839 = vmatprep.subr.bf16.mxu0 %v2679_v0  ;;  %v653_v45 = vadd.f32 %v2922_v60, %v375_v29  ;;  %v385_v9 = vmul.f32 %v2916_v54, %v270_v25 }
  0x82   : > { %v893_v56 = vmax.f32 %v637_v40, 0.0  ;;  %v891_v57 = vmax.f32 %v635_v42, 0.0  ;;  %v1146_v16 = vpack.c.bf16 %v902_v3, %v898_v62  ;;  %v384_v40 = vmul.f32 %v2887_v26, %v270_v25 }
  0x84   : > { %1551 = vmatpush1.bf16.msra.mxu1 %v2532_v50  ;;  %1840 = vmatpush1.bf16.msra.mxu0 %v2533_v52  ;;  %v1142_v50 = vpack.c.bf16 %v894_v34, %v890_v33  ;;  %v889_v52 = vmax.f32 %v633_v39, 0.0  ;;  %v1143_v13 = vpack.c.bf16 %v895_v61, %v891_v57 }
  0x85   : > { %1552 = vmatprep.subr.bf16.mxu1 %v2679_v0  ;;  %1841 = vmatprep.subr.bf16.mxu0 %v2679_v0 }
  0x86   : > { %v1141_v12 = vpack.c.bf16 %v893_v56, %v889_v52  ;;  %v662_v52 = vadd.f32 %v2894_v30, %v384_v40 }
  0x88   : > { %1553 = vmatpush1.bf16.msra.mxu1 %v2534_v55  ;;  %1842 = vmatpush1.bf16.msra.mxu0 %v2535_v58  ;;  %v267_v55 = vld [vmem:[%s2850_s12 + $0x30] sm:$0xff]  ;;  %v644_v58 = vadd.f32 %v2896_v31, %v366_v43  ;;  %v912_v43 = vmax.f32 %v656_v23, 0.0 }
  0x89   : > { %1554 = vmatprep.subr.bf16.mxu1 %v2679_v0  ;;  %1843 = vmatprep.subr.bf16.mxu0 %v2679_v0  ;;  %v372_v6 = vmul.f32 %v2887_v26, %v267_v55  ;;  %v374_v8 = vmul.f32 %v2892_v28, %v267_v55  ;;  %v371_v24 = vmul.f32 %v2913_v53, %v267_v55 }
  0x8a   : > { %v900_v10 = vmax.f32 %v644_v58, 0.0  ;;  %v373_v32 = vmul.f32 %v2916_v54, %v267_v55 }
  0x8b   : > { %v650_v19 = vadd.f32 %v2894_v30, %v372_v6  ;;  %v652_v22 = vadd.f32 %v2896_v31, %v374_v8  ;;  %v383_v6 = vmul.f32 %v2913_v53, %v270_v25  ;;  %v381_v8 = vmul.f32 %v2916_v54, %v269_v20 }
  0x8c   : > { %1555 = vmatpush1.bf16.msra.mxu1 %v2536_v4  ;;  %1844 = vmatpush1.bf16.msra.mxu0 %v2537_v7  ;;  %v365_v4 = vmul.f32 %v2916_v54, %v265_v14  ;;  %v376_v7 = vmul.f32 %v2887_v26, %v268_v59  ;;  %v641_v14 = vadd.f32 %v2922_v60, %v363_v1  ;;  %v909_v59 = vmax.f32 %v653_v45, 0.0 }
  0x8d   : > { %1556 = vmatprep.subr.bf16.mxu1 %v2679_v0  ;;  %1845 = vmatprep.subr.bf16.mxu0 %v2679_v0  ;;  %v906_v39 = vmax.f32 %v650_v19, 0.0  ;;  %v908_v42 = vmax.f32 %v652_v22, 0.0  ;;  %v651_v46 = vadd.f32 %v2927_v63, %v373_v32  ;;  %v664_v1 = vadd.f32 %v2896_v31, %v386_v48 }
  0x8e   : > { %v643_v17 = vadd.f32 %v2927_v63, %v365_v4  ;;  %v897_v33 = vmax.f32 %v641_v14, 0.0  ;;  %v661_v19 = vadd.f32 %v2922_v60, %v383_v6  ;;  %v663_v22 = vadd.f32 %v2927_v63, %v385_v9  ;;  %v276_v6 = vld [vmem:[%s2850_s12 + $0x78] sm:$0xff] }
  0x8f   : > { %v1152_v57 = vpack.c.bf16 %v912_v43, %v908_v42  ;;  %v907_v61 = vmax.f32 %v651_v46, 0.0 }
  0x90   : > { %1557 = vmatpush1.bf16.msra.mxu1 %v2538_v15  ;;  %1846 = vmatpush1.bf16.msra.mxu0 %v2539_v21  ;;  %v645_v15 = vadd.f32 %v2922_v60, %v367_v2  ;;  %v654_v21 = vadd.f32 %v2894_v30, %v376_v7  ;;  %v899_v37 = vmax.f32 %v643_v17, 0.0  ;;  %v272_v2 = vld [vmem:[%s2850_s12 + $0x58] sm:$0xff]  ;;  %v918_v7 = vmax.f32 %v662_v52, 0.0 }
  0x91   : > { %1558 = vmatprep.subr.bf16.mxu1 %v2679_v0  ;;  %1847 = vmatprep.subr.bf16.mxu0 %v2679_v0  ;;  %v648_v0 = vadd.f32 %v2896_v31, %v370_v44  ;;  %v649_v44 = vadd.f32 %v2922_v60, %v371_v24  ;;  %v273_v24 = vld [vmem:[%s2850_s12 + $0x60] sm:$0xff]  ;;  %v919_v42 = vmax.f32 %v663_v22, 0.0 }
  0x92   : > { %v901_v34 = vmax.f32 %v645_v15, 0.0  ;;  %v1147_v55 = vpack.c.bf16 %v903_v38, %v899_v37  ;;  %v920_v15 = vmax.f32 %v664_v1, 0.0  ;;  %v913_v37 = vmax.f32 %v657_v18, 0.0  ;;  %v275_v1 = vld [vmem:[%s2850_s12 + $0x70] sm:$0xff] }
  0x93   : > { %v904_v11 = vmax.f32 %v648_v0, 0.0  ;;  %v905_v58 = vmax.f32 %v649_v44, 0.0  ;;  %v271_v0 = vld [vmem:[%s2850_s12 + $0x50] sm:$0xff]  ;;  %v917_v38 = vmax.f32 %v661_v19, 0.0  ;;  %v396_v40 = vmul.f32 %v2887_v26, %v273_v24 }
  0x94   : > { %1559 = vmatpush1.bf16.msra.mxu1 %v2540_v36  ;;  %1848 = vmatpush1.bf16.msra.mxu0 %v2541_v41  ;;  %v380_v36 = vmul.f32 %v2887_v26, %v269_v20  ;;  %v910_v41 = vmax.f32 %v654_v21, 0.0  ;;  %v659_v21 = vadd.f32 %v2927_v63, %v381_v8  ;;  %v387_v32 = vmul.f32 %v2913_v53, %v271_v0 }
  0x95   : > { %v1148_v27 = vpack.c.bf16 %v904_v11, %v900_v10  ;;  %v388_v10 = vmul.f32 %v2887_v26, %v271_v0  ;;  %v392_v11 = vmul.f32 %v2887_v26, %v272_v2  ;;  %v395_v9 = vmul.f32 %v2913_v53, %v273_v24 }
  0x96   : > { %v1150_v56 = vpack.c.bf16 %v910_v41, %v906_v39  ;;  %v393_v39 = vmul.f32 %v2916_v54, %v272_v2  ;;  %v915_v41 = vmax.f32 %v659_v21, 0.0  ;;  %v665_v48 = vadd.f32 %v2922_v60, %v387_v32  ;;  %v277_v32 = vld [vmem:[%s2850_s12 + $0x80] sm:$0xff] }
  0x97   : > { %1561 = vmatmul.mubr.bf16.vlgmr.msra.gmra.mrb[0].mxu1 %v1137_v47  ;;  %1850 = vmatmul.mubr.bf16.vlgmr.msra.gmra.mrb[0].mxu0 %v1139_v49  ;;  %v382_v47 = vmul.f32 %v2892_v28, %v269_v20  ;;  %v655_v49 = vadd.f32 %v2927_v63, %v377_v35  ;;  %v666_v23 = vadd.f32 %v2894_v30, %v388_v10 }
  0x98   : > { %1568 = vmatprep.mubr.bf16.mxu1 %v1142_v50  ;;  %1857 = vmatprep.mubr.bf16.mxu0 %v1144_v51  ;;  %v658_v50 = vadd.f32 %v2894_v30, %v380_v36  ;;  %v1145_v51 = vpack.c.bf16 %v901_v34, %v897_v33  ;;  %v670_v25 = vadd.f32 %v2894_v30, %v392_v11  ;;  %v274_v33 = vld [vmem:[%s2850_s12 + $0x68] sm:$0xff] }
  0x99   : > { %v660_v62 = vadd.f32 %v2896_v31, %v382_v47  ;;  %v911_v3 = vmax.f32 %v655_v49, 0.0  ;;  %v391_v35 = vmul.f32 %v2913_v53, %v272_v2  ;;  %v389_v36 = vmul.f32 %v2916_v54, %v271_v0 }
  0x9a   : > { %v914_v4 = vmax.f32 %v658_v50, 0.0  ;;  %v922_v43 = vmax.f32 %v666_v23, 0.0  ;;  %v400_v44 = vmul.f32 %v2887_v26, %v274_v33  ;;  %v926_v45 = vmax.f32 %v670_v25, 0.0 }
  0x9b   : > { %v916_v14 = vmax.f32 %v660_v62, 0.0  ;;  %v1151_v17 = vpack.c.bf16 %v911_v3, %v907_v61  ;;  %v669_v49 = vadd.f32 %v2922_v60, %v391_v35  ;;  %v667_v50 = vadd.f32 %v2927_v63, %v389_v36 }
  0x9c   : > { %v1154_v20 = vpack.c.bf16 %v918_v7, %v914_v4  ;;  %v402_v52 = vmul.f32 %v2892_v28, %v274_v33  ;;  %v921_v62 = vmax.f32 %v665_v48, 0.0  ;;  %v399_v10 = vmul.f32 %v2913_v53, %v274_v33 }
  0x9d   : > { %v1156_v34 = vpack.c.bf16 %v920_v15, %v916_v14  ;;  %v923_v3 = vmax.f32 %v667_v50, 0.0  ;;  %v404_v14 = vmul.f32 %v2887_v26, %v275_v1  ;;  %v408_v15 = vmul.f32 %v2887_v26, %v276_v6 }
  0x9e   : > { %v680_v5 = vadd.f32 %v2896_v31, %v402_v52  ;;  %v673_v22 = vadd.f32 %v2922_v60, %v395_v9  ;;  %v677_v23 = vadd.f32 %v2922_v60, %v399_v10  ;;  %v403_v36 = vmul.f32 %v2913_v53, %v275_v1  ;;  %v280_v10 = vld [vmem:[%s2850_s12 + $0x98] sm:$0xff] }
  0x9f   : > { %1569 = vmatmul.mubr.bf16.gmra.mrb[4].mxu1 %v1141_v12  ;;  %1858 = vmatmul.mubr.bf16.gmra.mrb[4].mxu0 %v1143_v13  ;;  %v390_v12 = vmul.f32 %v2892_v28, %v271_v0  ;;  %v394_v13 = vmul.f32 %v2892_v28, %v272_v2  ;;  %v1155_v0 = vpack.c.bf16 %v919_v42, %v915_v41  ;;  %v925_v2 = vmax.f32 %v669_v49, 0.0 }
  0xa0   : > { %1576 = vmatprep.mubr.bf16.mxu1 %v1146_v16  ;;  %1865 = vmatprep.mubr.bf16.mxu0 %v1148_v27  ;;  %v1149_v16 = vpack.c.bf16 %v909_v59, %v905_v58  ;;  %v678_v58 = vadd.f32 %v2894_v30, %v400_v44  ;;  %v1158_v59 = vpack.c.bf16 %v926_v45, %v922_v43  ;;  %v936_v19 = vmax.f32 %v680_v5, 0.0  ;;  %v279_v5 = vld [vmem:[%s2850_s12 + $0x90] sm:$0xff] }
  0xa1   : > { %v668_v27 = vadd.f32 %v2896_v31, %v390_v12  ;;  %v672_v29 = vadd.f32 %v2896_v31, %v394_v13  ;;  %v397_v12 = vmul.f32 %v2916_v54, %v273_v24  ;;  %v401_v13 = vmul.f32 %v2916_v54, %v274_v33 }
  0xa2   : > { %v934_v11 = vmax.f32 %v678_v58, 0.0  ;;  %v686_v33 = vadd.f32 %v2894_v30, %v408_v15  ;;  %v929_v41 = vmax.f32 %v673_v22, 0.0  ;;  %v933_v42 = vmax.f32 %v677_v23, 0.0 }
  0xa3   : > { %v924_v46 = vmax.f32 %v668_v27, 0.0  ;;  %v928_v47 = vmax.f32 %v672_v29, 0.0  ;;  %v675_v25 = vadd.f32 %v2927_v63, %v397_v12  ;;  %v679_v27 = vadd.f32 %v2927_v63, %v401_v13 }
  0xa4   : > { %v682_v29 = vadd.f32 %v2894_v30, %v404_v14  ;;  %v409_v43 = vmul.f32 %v2916_v54, %v276_v6  ;;  %v412_v44 = vmul.f32 %v2887_v26, %v277_v32  ;;  %v942_v49 = vmax.f32 %v686_v33, 0.0 }
  0xa5   : > { %v1160_v61 = vpack.c.bf16 %v928_v47, %v924_v46  ;;  %v931_v45 = vmax.f32 %v675_v25, 0.0  ;;  %v935_v46 = vmax.f32 %v679_v27, 0.0  ;;  %v681_v52 = vadd.f32 %v2922_v60, %v403_v36  ;;  %v281_v36 = vld [vmem:[%s2850_s12 + $0xa0] sm:$0xff] }
  0xa6   : > { %v938_v47 = vmax.f32 %v682_v29, 0.0  ;;  %v411_v13 = vmul.f32 %v2913_v53, %v277_v32 }
  0xa7   : > { %1577 = vmatmul.mubr.bf16.gmra.mrb[8].mxu1 %v1145_v51  ;;  %1866 = vmatmul.mubr.bf16.gmra.mrb[8].mxu0 %v1147_v55  ;;  %v398_v51 = vmul.f32 %v2892_v28, %v273_v24  ;;  %v671_v55 = vadd.f32 %v2927_v63, %v393_v39  ;;  %v407_v39 = vmul.f32 %v2913_v53, %v276_v6 }
  0xa8   : > { %1584 = vmatprep.mubr.bf16.mxu1 %v1150_v56  ;;  %1873 = vmatprep.mubr.bf16.mxu0 %v1152_v57  ;;  %v674_v56 = vadd.f32 %v2894_v30, %v396_v40  ;;  %v1153_v57 = vpack.c.bf16 %v917_v38, %v913_v37  ;;  %v278_v37 = vld [vmem:[%s2850_s12 + $0x88] sm:$0xff]  ;;  %v405_v40 = vmul.f32 %v2916_v54, %v275_v1 }
  0xa9   : > { %v676_v4 = vadd.f32 %v2896_v31, %v398_v51  ;;  %v927_v7 = vmax.f32 %v671_v55, 0.0  ;;  %v416_v48 = vmul.f32 %v2887_v26, %v278_v37  ;;  %v685_v55 = vadd.f32 %v2922_v60, %v407_v39 }
  0xaa   : > { %v930_v8 = vmax.f32 %v674_v56, 0.0  ;;  %v683_v56 = vadd.f32 %v2927_v63, %v405_v40  ;;  %v418_v58 = vmul.f32 %v2892_v28, %v278_v37  ;;  %v415_v14 = vmul.f32 %v2913_v53, %v278_v37 }
  0xab   : > { %v932_v18 = vmax.f32 %v676_v4, 0.0  ;;  %v1159_v21 = vpack.c.bf16 %v927_v7, %v923_v3  ;;  %v937_v4 = vmax.f32 %v681_v52, 0.0  ;;  %v689_v27 = vadd.f32 %v2922_v60, %v411_v13 }
  0xac   : > { %v1162_v24 = vpack.c.bf16 %v934_v11, %v930_v8  ;;  %v939_v7 = vmax.f32 %v683_v56, 0.0  ;;  %v696_v9 = vadd.f32 %v2896_v31, %v418_v58  ;;  %v693_v29 = vadd.f32 %v2922_v60, %v415_v14  ;;  %v284_v14 = vld [vmem:[%s2850_s12 + $0xb8] sm:$0xff] }
  0xad   : > { %v1164_v38 = vpack.c.bf16 %v936_v19, %v932_v18  ;;  %v420_v18 = vmul.f32 %v2887_v26, %v279_v5  ;;  %v424_v19 = vmul.f32 %v2887_v26, %v280_v10  ;;  %v419_v40 = vmul.f32 %v2913_v53, %v279_v5 }
  0xae   : > { %v952_v23 = vmax.f32 %v696_v9, 0.0  ;;  %v283_v9 = vld [vmem:[%s2850_s12 + $0xb0] sm:$0xff] }
  0xaf   : > { %1585 = vmatmul.mubr.bf16.gmra.mrb[12].mxu1 %v1149_v16  ;;  %1874 = vmatmul.mubr.bf16.gmra.mrb[12].mxu0 %v1151_v17  ;;  %v406_v16 = vmul.f32 %v2892_v28, %v275_v1  ;;  %v410_v17 = vmul.f32 %v2892_v28, %v276_v6  ;;  %v1163_v1 = vpack.c.bf16 %v935_v46, %v931_v45  ;;  %v941_v6 = vmax.f32 %v685_v55, 0.0 }
  0xb0   : > { %1592 = vmatprep.mubr.bf16.mxu1 %v1154_v20  ;;  %1881 = vmatprep.mubr.bf16.mxu0 %v1156_v34  ;;  %v1157_v20 = vpack.c.bf16 %v925_v2, %v921_v62  ;;  %v694_v62 = vadd.f32 %v2894_v30, %v416_v48  ;;  %v1166_v2 = vpack.c.bf16 %v942_v49, %v938_v47  ;;  %v945_v45 = vmax.f32 %v689_v27, 0.0 }
  0xb1   : > { %v684_v34 = vadd.f32 %v2896_v31, %v406_v16  ;;  %v688_v35 = vadd.f32 %v2896_v31, %v410_v17  ;;  %v413_v16 = vmul.f32 %v2916_v54, %v277_v32  ;;  %v417_v17 = vmul.f32 %v2916_v54, %v278_v37 }
  0xb2   : > { %v950_v15 = vmax.f32 %v694_v62, 0.0  ;;  %v702_v37 = vadd.f32 %v2894_v30, %v424_v19  ;;  %v949_v46 = vmax.f32 %v693_v29, 0.0  ;;  %v425_v47 = vmul.f32 %v2916_v54, %v280_v10 }
  0xb3   : > { %v940_v50 = vmax.f32 %v684_v34, 0.0  ;;  %v944_v51 = vmax.f32 %v688_v35, 0.0  ;;  %v691_v33 = vadd.f32 %v2927_v63, %v413_v16  ;;  %v695_v34 = vadd.f32 %v2927_v63, %v417_v17 }
  0xb4   : > { %v698_v35 = vadd.f32 %v2894_v30, %v420_v18  ;;  %v428_v48 = vmul.f32 %v2887_v26, %v281_v36  ;;  %v958_v55 = vmax.f32 %v702_v37, 0.0  ;;  %v697_v58 = vadd.f32 %v2922_v60, %v419_v40  ;;  %v285_v40 = vld [vmem:[%s2850_s12 + $0xc0] sm:$0xff] }
  0xb5   : > { %v1168_v3 = vpack.c.bf16 %v944_v51, %v940_v50  ;;  %v947_v49 = vmax.f32 %v691_v33, 0.0  ;;  %v951_v50 = vmax.f32 %v695_v34, 0.0  ;;  %v427_v17 = vmul.f32 %v2913_v53, %v281_v36 }
  0xb6   : > { %v954_v51 = vmax.f32 %v698_v35, 0.0 }
  0xb7   : > { %1593 = vmatmul.mubr.bf16.gmra.mrb[16].mxu1 %v1153_v57  ;;  %1882 = vmatmul.mubr.bf16.gmra.mrb[16].mxu0 %v1155_v0  ;;  %v414_v57 = vmul.f32 %v2892_v28, %v277_v32  ;;  %v687_v0 = vadd.f32 %v2927_v63, %v409_v43  ;;  %v423_v43 = vmul.f32 %v2913_v53, %v280_v10 }
  0xb8   : > { %1600 = vmatprep.mubr.bf16.mxu1 %v1158_v59  ;;  %1889 = vmatprep.mubr.bf16.mxu0 %v1160_v61  ;;  %v690_v59 = vadd.f32 %v2894_v30, %v412_v44  ;;  %v1161_v61 = vpack.c.bf16 %v933_v42, %v929_v41  ;;  %v282_v41 = vld [vmem:[%s2850_s12 + $0xa8] sm:$0xff]  ;;  %v421_v44 = vmul.f32 %v2916_v54, %v279_v5 }
  0xb9   : > { %v692_v8 = vadd.f32 %v2896_v31, %v414_v57  ;;  %v943_v11 = vmax.f32 %v687_v0, 0.0  ;;  %v432_v52 = vmul.f32 %v2887_v26, %v282_v41  ;;  %v701_v0 = vadd.f32 %v2922_v60, %v423_v43 }
  0xba   : > { %v946_v12 = vmax.f32 %v690_v59, 0.0  ;;  %v699_v59 = vadd.f32 %v2927_v63, %v421_v44  ;;  %v434_v62 = vmul.f32 %v2892_v28, %v282_v41  ;;  %v431_v18 = vmul.f32 %v2913_v53, %v282_v41 }
  0xbb   : > { %v948_v22 = vmax.f32 %v692_v8, 0.0  ;;  %v1167_v25 = vpack.c.bf16 %v943_v11, %v939_v7  ;;  %v953_v8 = vmax.f32 %v697_v58, 0.0  ;;  %v705_v34 = vadd.f32 %v2922_v60, %v427_v17 }
  0xbc   : > { %v1170_v32 = vpack.c.bf16 %v950_v15, %v946_v12  ;;  %v955_v11 = vmax.f32 %v699_v59, 0.0  ;;  %v712_v13 = vadd.f32 %v2896_v31, %v434_v62  ;;  %v709_v35 = vadd.f32 %v2922_v60, %v431_v18  ;;  %v288_v18 = vld [vmem:[%s2850_s12 + $0xd8] sm:$0xff] }
  0xbd   : > { %v1172_v42 = vpack.c.bf16 %v952_v23, %v948_v22  ;;  %v436_v22 = vmul.f32 %v2887_v26, %v283_v9  ;;  %v440_v23 = vmul.f32 %v2887_v26, %v284_v14  ;;  %v435_v44 = vmul.f32 %v2913_v53, %v283_v9 }
  0xbe   : > { %v968_v29 = vmax.f32 %v712_v13, 0.0  ;;  %v287_v13 = vld [vmem:[%s2850_s12 + $0xd0] sm:$0xff] }
  0xbf   : > { %1601 = vmatmul.mubr.bf16.gmra.mrb[20].mxu1 %v1157_v20  ;;  %1890 = vmatmul.mubr.bf16.gmra.mrb[20].mxu0 %v1159_v21  ;;  %v422_v20 = vmul.f32 %v2892_v28, %v279_v5  ;;  %v426_v21 = vmul.f32 %v2892_v28, %v280_v10  ;;  %v1171_v5 = vpack.c.bf16 %v951_v50, %v947_v49  ;;  %v957_v10 = vmax.f32 %v701_v0, 0.0 }
  0xc0   : > { %1608 = vmatprep.mubr.bf16.mxu1 %v1162_v24  ;;  %1897 = vmatprep.mubr.bf16.mxu0 %v1164_v38  ;;  %v1165_v24 = vpack.c.bf16 %v941_v6, %v937_v4  ;;  %v710_v4 = vadd.f32 %v2894_v30, %v432_v52  ;;  %v1174_v6 = vpack.c.bf16 %v958_v55, %v954_v51  ;;  %v961_v49 = vmax.f32 %v705_v34, 0.0 }
  0xc1   : > { %v700_v38 = vadd.f32 %v2896_v31, %v422_v20  ;;  %v704_v39 = vadd.f32 %v2896_v31, %v426_v21  ;;  %v429_v20 = vmul.f32 %v2916_v54, %v281_v36  ;;  %v433_v21 = vmul.f32 %v2916_v54, %v282_v41 }
  0xc2   : > { %v966_v19 = vmax.f32 %v710_v4, 0.0  ;;  %v718_v41 = vadd.f32 %v2894_v30, %v440_v23  ;;  %v965_v50 = vmax.f32 %v709_v35, 0.0  ;;  %v441_v51 = vmul.f32 %v2916_v54, %v284_v14 }
  0xc3   : > { %v956_v56 = vmax.f32 %v700_v38, 0.0  ;;  %v960_v57 = vmax.f32 %v704_v39, 0.0  ;;  %v707_v37 = vadd.f32 %v2927_v63, %v429_v20  ;;  %v711_v38 = vadd.f32 %v2927_v63, %v433_v21 }
  0xc4   : > { %v714_v39 = vadd.f32 %v2894_v30, %v436_v22  ;;  %v444_v52 = vmul.f32 %v2887_v26, %v285_v40  ;;  %v974_v0 = vmax.f32 %v718_v41, 0.0  ;;  %v713_v62 = vadd.f32 %v2922_v60, %v435_v44  ;;  %v289_v44 = vld [vmem:[%s2850_s12 + $0xe0] sm:$0xff] }
  0xc5   : > { %v1176_v7 = vpack.c.bf16 %v960_v57, %v956_v56  ;;  %v963_v55 = vmax.f32 %v707_v37, 0.0  ;;  %v967_v56 = vmax.f32 %v711_v38, 0.0  ;;  %v443_v21 = vmul.f32 %v2913_v53, %v285_v40 }
  0xc6   : > { %v970_v57 = vmax.f32 %v714_v39, 0.0 }
  0xc7   : > { %1609 = vmatmul.mubr.bf16.gmra.mrb[24].mxu1 %v1161_v61  ;;  %1898 = vmatmul.mubr.bf16.gmra.mrb[24].mxu0 %v1163_v1  ;;  %v430_v61 = vmul.f32 %v2892_v28, %v281_v36  ;;  %v703_v1 = vadd.f32 %v2927_v63, %v425_v47  ;;  %v439_v47 = vmul.f32 %v2913_v53, %v284_v14 }
  0xc8   : > { %1616 = vmatprep.mubr.bf16.mxu1 %v1166_v2  ;;  %1905 = vmatprep.mubr.bf16.mxu0 %v1168_v3  ;;  %v706_v2 = vadd.f32 %v2894_v30, %v428_v48  ;;  %v1169_v3 = vpack.c.bf16 %v949_v46, %v945_v45  ;;  %v286_v45 = vld [vmem:[%s2850_s12 + $0xc8] sm:$0xff]  ;;  %v437_v48 = vmul.f32 %v2916_v54, %v283_v9 }
  0xc9   : > { %v708_v12 = vadd.f32 %v2896_v31, %v430_v61  ;;  %v959_v15 = vmax.f32 %v703_v1, 0.0  ;;  %v448_v58 = vmul.f32 %v2887_v26, %v286_v45  ;;  %v717_v1 = vadd.f32 %v2922_v60, %v439_v47 }
  0xca   : > { %v962_v16 = vmax.f32 %v706_v2, 0.0  ;;  %v715_v2 = vadd.f32 %v2927_v63, %v437_v48  ;;  %v450_v4 = vmul.f32 %v2892_v28, %v286_v45  ;;  %v447_v22 = vmul.f32 %v2913_v53, %v286_v45 }
  0xcb   : > { %v964_v27 = vmax.f32 %v708_v12, 0.0  ;;  %v1175_v33 = vpack.c.bf16 %v959_v15, %v955_v11  ;;  %v969_v12 = vmax.f32 %v713_v62, 0.0  ;;  %v721_v38 = vadd.f32 %v2922_v60, %v443_v21 }
  0xcc   : > { %v1178_v36 = vpack.c.bf16 %v966_v19, %v962_v16  ;;  %v971_v15 = vmax.f32 %v715_v2, 0.0  ;;  %v728_v17 = vadd.f32 %v2896_v31, %v450_v4  ;;  %v725_v39 = vadd.f32 %v2922_v60, %v447_v22  ;;  %v292_v22 = vld [vmem:[%s2850_s12 + $0xf8] sm:$0xff] }
  0xcd   : > { %v1180_v46 = vpack.c.bf16 %v968_v29, %v964_v27  ;;  %v452_v27 = vmul.f32 %v2887_v26, %v287_v13  ;;  %v456_v29 = vmul.f32 %v2887_v26, %v288_v18  ;;  %v451_v48 = vmul.f32 %v2913_v53, %v287_v13 }
  0xce   : > { %v984_v35 = vmax.f32 %v728_v17, 0.0  ;;  %v291_v17 = vld [vmem:[%s2850_s12 + $0xf0] sm:$0xff] }
  0xcf   : > { %1617 = vmatmul.mubr.bf16.gmra.mrb[28].mxu1 %v1165_v24  ;;  %1906 = vmatmul.mubr.bf16.gmra.mrb[28].mxu0 %v1167_v25  ;;  %v438_v24 = vmul.f32 %v2892_v28, %v283_v9  ;;  %v442_v25 = vmul.f32 %v2892_v28, %v284_v14  ;;  %v1179_v9 = vpack.c.bf16 %v967_v56, %v963_v55  ;;  %v973_v14 = vmax.f32 %v717_v1, 0.0 }
  0xd0   : > { %1624 = vmatprep.mubr.bf16.mxu1 %v1170_v32  ;;  %1913 = vmatprep.mubr.bf16.mxu0 %v1172_v42  ;;  %v1173_v32 = vpack.c.bf16 %v957_v10, %v953_v8  ;;  %v726_v8 = vadd.f32 %v2894_v30, %v448_v58  ;;  %v1182_v10 = vpack.c.bf16 %v974_v0, %v970_v57  ;;  %v977_v55 = vmax.f32 %v721_v38, 0.0 }
  0xd1   : > { %v716_v42 = vadd.f32 %v2896_v31, %v438_v24  ;;  %v720_v43 = vadd.f32 %v2896_v31, %v442_v25  ;;  %v445_v24 = vmul.f32 %v2916_v54, %v285_v40  ;;  %v449_v25 = vmul.f32 %v2916_v54, %v286_v45 }
  0xd2   : > { %v982_v23 = vmax.f32 %v726_v8, 0.0  ;;  %v734_v45 = vadd.f32 %v2894_v30, %v456_v29  ;;  %v981_v56 = vmax.f32 %v725_v39, 0.0  ;;  %v457_v57 = vmul.f32 %v2916_v54, %v288_v18 }
  0xd3   : > { %v972_v59 = vmax.f32 %v716_v42, 0.0  ;;  %v976_v61 = vmax.f32 %v720_v43, 0.0  ;;  %v723_v41 = vadd.f32 %v2927_v63, %v445_v24  ;;  %v727_v42 = vadd.f32 %v2927_v63, %v449_v25 }
  0xd4   : > { %v730_v43 = vadd.f32 %v2894_v30, %v452_v27  ;;  %v460_v58 = vmul.f32 %v2887_v26, %v289_v44  ;;  %v990_v1 = vmax.f32 %v734_v45, 0.0  ;;  %v729_v4 = vadd.f32 %v2922_v60, %v451_v48  ;;  %v293_v48 = vld [vmem:[%s2850_s12 + $0x100] sm:$0xff] }
  0xd5   : > { %v1184_v11 = vpack.c.bf16 %v976_v61, %v972_v59  ;;  %v979_v0 = vmax.f32 %v723_v41, 0.0  ;;  %v983_v59 = vmax.f32 %v727_v42, 0.0  ;;  %v459_v25 = vmul.f32 %v2913_v53, %v289_v44 }
  0xd6   : > { %v986_v61 = vmax.f32 %v730_v43, 0.0 }
  0xd7   : > { %1625 = vmatmul.mubr.bf16.gmra.mrb[32].mxu1 %v1169_v3  ;;  %1914 = vmatmul.mubr.bf16.gmra.mrb[32].mxu0 %v1171_v5  ;;  %v446_v3 = vmul.f32 %v2892_v28, %v285_v40  ;;  %v719_v5 = vadd.f32 %v2927_v63, %v441_v51  ;;  %v455_v51 = vmul.f32 %v2913_v53, %v288_v18 }
  0xd8   : > { %1632 = vmatprep.mubr.bf16.mxu1 %v1174_v6  ;;  %1921 = vmatprep.mubr.bf16.mxu0 %v1176_v7  ;;  %v722_v6 = vadd.f32 %v2894_v30, %v444_v52  ;;  %v1177_v7 = vpack.c.bf16 %v965_v50, %v961_v49  ;;  %v290_v49 = vld [vmem:[%s2850_s12 + $0xe8] sm:$0xff]  ;;  %v453_v52 = vmul.f32 %v2916_v54, %v287_v13 }
  0xd9   : > { %v724_v16 = vadd.f32 %v2896_v31, %v446_v3  ;;  %v975_v19 = vmax.f32 %v719_v5, 0.0  ;;  %v464_v62 = vmul.f32 %v2887_v26, %v290_v49  ;;  %v733_v5 = vadd.f32 %v2922_v60, %v455_v51 }
  0xda   : > { %v978_v20 = vmax.f32 %v722_v6, 0.0  ;;  %v731_v6 = vadd.f32 %v2927_v63, %v453_v52  ;;  %v466_v8 = vmul.f32 %v2892_v28, %v290_v49  ;;  %v463_v27 = vmul.f32 %v2913_v53, %v290_v49 }
  0xdb   : > { %v980_v34 = vmax.f32 %v724_v16, 0.0  ;;  %v1183_v37 = vpack.c.bf16 %v975_v19, %v971_v15  ;;  %v985_v16 = vmax.f32 %v729_v4, 0.0  ;;  %v737_v42 = vadd.f32 %v2922_v60, %v459_v25 }
  0xdc   : > { %v1186_v40 = vpack.c.bf16 %v982_v23, %v978_v20  ;;  %v987_v19 = vmax.f32 %v731_v6, 0.0  ;;  %v744_v21 = vadd.f32 %v2896_v31, %v466_v8  ;;  %v741_v43 = vadd.f32 %v2922_v60, %v463_v27  ;;  %v296_v27 = vld [vmem:[%s2850_s12 + $0x118] sm:$0xff] }
  0xdd   : > { %v1188_v50 = vpack.c.bf16 %v984_v35, %v980_v34  ;;  %v468_v34 = vmul.f32 %v2887_v26, %v291_v17  ;;  %v472_v35 = vmul.f32 %v2887_v26, %v292_v22  ;;  %v467_v52 = vmul.f32 %v2913_v53, %v291_v17 }
  0xde   : > { %v1000_v39 = vmax.f32 %v744_v21, 0.0  ;;  %v295_v21 = vld [vmem:[%s2850_s12 + $0x110] sm:$0xff] }
  0xdf   : > { %1633 = vmatmul.mubr.bf16.gmra.mrb[36].mxu1 %v1173_v32  ;;  %1922 = vmatmul.mubr.bf16.gmra.mrb[36].mxu0 %v1175_v33  ;;  %v454_v32 = vmul.f32 %v2892_v28, %v287_v13  ;;  %v458_v33 = vmul.f32 %v2892_v28, %v288_v18  ;;  %v1187_v13 = vpack.c.bf16 %v983_v59, %v979_v0  ;;  %v989_v18 = vmax.f32 %v733_v5, 0.0 }
  0xe0   : > { %1640 = vmatprep.mubr.bf16.mxu1 %v1178_v36  ;;  %1929 = vmatprep.mubr.bf16.mxu0 %v1180_v46  ;;  %v1181_v36 = vpack.c.bf16 %v973_v14, %v969_v12  ;;  %v742_v12 = vadd.f32 %v2894_v30, %v464_v62  ;;  %v1190_v14 = vpack.c.bf16 %v990_v1, %v986_v61  ;;  %v993_v0 = vmax.f32 %v737_v42, 0.0 }
  0xe1   : > { %v732_v46 = vadd.f32 %v2896_v31, %v454_v32  ;;  %v736_v47 = vadd.f32 %v2896_v31, %v458_v33  ;;  %v461_v32 = vmul.f32 %v2916_v54, %v289_v44  ;;  %v465_v33 = vmul.f32 %v2916_v54, %v290_v49 }
  0xe2   : > { %v998_v29 = vmax.f32 %v742_v12, 0.0  ;;  %v750_v49 = vadd.f32 %v2894_v30, %v472_v35  ;;  %v997_v59 = vmax.f32 %v741_v43, 0.0  ;;  %v473_v61 = vmul.f32 %v2916_v54, %v292_v22 }
  0xe3   : > { %v988_v2 = vmax.f32 %v732_v46, 0.0  ;;  %v992_v3 = vmax.f32 %v736_v47, 0.0  ;;  %v739_v45 = vadd.f32 %v2927_v63, %v461_v32  ;;  %v743_v46 = vadd.f32 %v2927_v63, %v465_v33 }
  0xe4   : > { %v746_v47 = vadd.f32 %v2894_v30, %v468_v34  ;;  %v476_v62 = vmul.f32 %v2887_v26, %v293_v48  ;;  %v1006_v5 = vmax.f32 %v750_v49, 0.0  ;;  %v745_v8 = vadd.f32 %v2922_v60, %v467_v52  ;;  %v297_v52 = vld [vmem:[%s2850_s12 + $0x120] sm:$0xff] }
  0xe5   : > { %v1192_v15 = vpack.c.bf16 %v992_v3, %v988_v2  ;;  %v995_v1 = vmax.f32 %v739_v45, 0.0  ;;  %v999_v2 = vmax.f32 %v743_v46, 0.0  ;;  %v475_v33 = vmul.f32 %v2913_v53, %v293_v48 }
  0xe6   : > { %v1002_v3 = vmax.f32 %v746_v47, 0.0 }
  0xe7   : > { %1641 = vmatmul.mubr.bf16.gmra.mrb[40].mxu1 %v1177_v7  ;;  %1930 = vmatmul.mubr.bf16.gmra.mrb[40].mxu0 %v1179_v9  ;;  %v462_v7 = vmul.f32 %v2892_v28, %v289_v44  ;;  %v735_v9 = vadd.f32 %v2927_v63, %v457_v57  ;;  %v471_v57 = vmul.f32 %v2913_v53, %v292_v22 }
  0xe8   : > { %1648 = vmatprep.mubr.bf16.mxu1 %v1182_v10  ;;  %1937 = vmatprep.mubr.bf16.mxu0 %v1184_v11  ;;  %v738_v10 = vadd.f32 %v2894_v30, %v460_v58  ;;  %v1185_v11 = vpack.c.bf16 %v981_v56, %v977_v55  ;;  %v294_v55 = vld [vmem:[%s2850_s12 + $0x108] sm:$0xff]  ;;  %v469_v58 = vmul.f32 %v2916_v54, %v291_v17 }
  0xe9   : > { %v740_v20 = vadd.f32 %v2896_v31, %v462_v7  ;;  %v991_v23 = vmax.f32 %v735_v9, 0.0  ;;  %v480_v4 = vmul.f32 %v2887_v26, %v294_v55  ;;  %v749_v9 = vadd.f32 %v2922_v60, %v471_v57 }
  0xea   : > { %v994_v24 = vmax.f32 %v738_v10, 0.0  ;;  %v747_v10 = vadd.f32 %v2927_v63, %v469_v58  ;;  %v482_v12 = vmul.f32 %v2892_v28, %v294_v55  ;;  %v479_v34 = vmul.f32 %v2913_v53, %v294_v55 }
  0xeb   : > { %v996_v38 = vmax.f32 %v740_v20, 0.0  ;;  %v1191_v41 = vpack.c.bf16 %v991_v23, %v987_v19  ;;  %v1001_v20 = vmax.f32 %v745_v8, 0.0  ;;  %v753_v46 = vadd.f32 %v2922_v60, %v475_v33 }
  0xec   : > { %v1194_v44 = vpack.c.bf16 %v998_v29, %v994_v24  ;;  %v1003_v23 = vmax.f32 %v747_v10, 0.0  ;;  %v760_v25 = vadd.f32 %v2896_v31, %v482_v12  ;;  %v757_v47 = vadd.f32 %v2922_v60, %v479_v34  ;;  %v300_v34 = vld [vmem:[%s2850_s12 + $0x138] sm:$0xff] }
  0xed   : > { %v1196_v56 = vpack.c.bf16 %v1000_v39, %v996_v38  ;;  %v484_v38 = vmul.f32 %v2887_v26, %v295_v21  ;;  %v488_v39 = vmul.f32 %v2887_v26, %v296_v27  ;;  %v483_v58 = vmul.f32 %v2913_v53, %v295_v21 }
  0xee   : > { %v1016_v43 = vmax.f32 %v760_v25, 0.0  ;;  %v299_v25 = vld [vmem:[%s2850_s12 + $0x130] sm:$0xff] }
  0xef   : > { %1649 = vmatmul.mubr.bf16.gmra.mrb[44].mxu1 %v1181_v36  ;;  %1938 = vmatmul.mubr.bf16.gmra.mrb[44].mxu0 %v1183_v37  ;;  %v470_v36 = vmul.f32 %v2892_v28, %v291_v17  ;;  %v474_v37 = vmul.f32 %v2892_v28, %v292_v22  ;;  %v1195_v17 = vpack.c.bf16 %v999_v2, %v995_v1  ;;  %v1005_v22 = vmax.f32 %v749_v9, 0.0 }
  0xf0   : > { %1656 = vmatprep.mubr.bf16.mxu1 %v1186_v40  ;;  %1945 = vmatprep.mubr.bf16.mxu0 %v1188_v50  ;;  %v1189_v40 = vpack.c.bf16 %v989_v18, %v985_v16  ;;  %v758_v16 = vadd.f32 %v2894_v30, %v480_v4  ;;  %v1198_v18 = vpack.c.bf16 %v1006_v5, %v1002_v3  ;;  %v1009_v1 = vmax.f32 %v753_v46, 0.0 }
  0xf1   : > { %v748_v50 = vadd.f32 %v2896_v31, %v470_v36  ;;  %v752_v51 = vadd.f32 %v2896_v31, %v474_v37  ;;  %v477_v36 = vmul.f32 %v2916_v54, %v293_v48  ;;  %v481_v37 = vmul.f32 %v2916_v54, %v294_v55 }
  0xf2   : > { %v1014_v35 = vmax.f32 %v758_v16, 0.0  ;;  %v766_v55 = vadd.f32 %v2894_v30, %v488_v39  ;;  %v1013_v2 = vmax.f32 %v757_v47, 0.0  ;;  %v489_v3 = vmul.f32 %v2916_v54, %v296_v27 }
  0xf3   : > { %v1004_v6 = vmax.f32 %v748_v50, 0.0  ;;  %v1008_v7 = vmax.f32 %v752_v51, 0.0  ;;  %v755_v49 = vadd.f32 %v2927_v63, %v477_v36  ;;  %v759_v50 = vadd.f32 %v2927_v63, %v481_v37 }
  0xf4   : > { %v762_v51 = vadd.f32 %v2894_v30, %v484_v38  ;;  %v492_v4 = vmul.f32 %v2887_v26, %v297_v52  ;;  %v1022_v9 = vmax.f32 %v766_v55, 0.0  ;;  %v761_v12 = vadd.f32 %v2922_v60, %v483_v58  ;;  %v301_v58 = vld [vmem:[%s2850_s12 + $0x140] sm:$0xff] }
  0xf5   : > { %v1200_v19 = vpack.c.bf16 %v1008_v7, %v1004_v6  ;;  %v1011_v5 = vmax.f32 %v755_v49, 0.0  ;;  %v1015_v6 = vmax.f32 %v759_v50, 0.0  ;;  %v491_v37 = vmul.f32 %v2913_v53, %v297_v52 }
  0xf6   : > { %v1018_v7 = vmax.f32 %v762_v51, 0.0 }
  0xf7   : > { %1657 = vmatmul.mubr.bf16.gmra.mrb[48].mxu1 %v1185_v11  ;;  %1946 = vmatmul.mubr.bf16.gmra.mrb[48].mxu0 %v1187_v13  ;;  %v478_v11 = vmul.f32 %v2892_v28, %v293_v48  ;;  %v751_v13 = vadd.f32 %v2927_v63, %v473_v61  ;;  %v487_v61 = vmul.f32 %v2913_v53, %v296_v27 }
  0xf8   : > { %1664 = vmatprep.mubr.bf16.mxu1 %v1190_v14  ;;  %1953 = vmatprep.mubr.bf16.mxu0 %v1192_v15  ;;  %v754_v14 = vadd.f32 %v2894_v30, %v476_v62  ;;  %v1193_v15 = vpack.c.bf16 %v997_v59, %v993_v0  ;;  %v298_v0 = vld [vmem:[%s2850_s12 + $0x128] sm:$0xff]  ;;  %v485_v62 = vmul.f32 %v2916_v54, %v295_v21 }
  0xf9   : > { %v756_v24 = vadd.f32 %v2896_v31, %v478_v11  ;;  %v1007_v29 = vmax.f32 %v751_v13, 0.0  ;;  %v496_v8 = vmul.f32 %v2887_v26, %v298_v0  ;;  %v765_v13 = vadd.f32 %v2922_v60, %v487_v61 }
  0xfa   : > { %v1010_v32 = vmax.f32 %v754_v14, 0.0  ;;  %v763_v14 = vadd.f32 %v2927_v63, %v485_v62  ;;  %v498_v16 = vmul.f32 %v2892_v28, %v298_v0  ;;  %v495_v38 = vmul.f32 %v2913_v53, %v298_v0 }
  0xfb   : > { %v1012_v42 = vmax.f32 %v756_v24, 0.0  ;;  %v1199_v45 = vpack.c.bf16 %v1007_v29, %v1003_v23  ;;  %v1017_v24 = vmax.f32 %v761_v12, 0.0  ;;  %v769_v50 = vadd.f32 %v2922_v60, %v491_v37 }
  0xfc   : > { %v1202_v48 = vpack.c.bf16 %v1014_v35, %v1010_v32  ;;  %v1019_v29 = vmax.f32 %v763_v14, 0.0  ;;  %v776_v33 = vadd.f32 %v2896_v31, %v498_v16  ;;  %v773_v51 = vadd.f32 %v2922_v60, %v495_v38  ;;  %v304_v38 = vld [vmem:[%s2850_s12 + $0x158] sm:$0xff] }
  0xfd   : > { %v1204_v59 = vpack.c.bf16 %v1016_v43, %v1012_v42  ;;  %v500_v42 = vmul.f32 %v2887_v26, %v299_v25  ;;  %v504_v43 = vmul.f32 %v2887_v26, %v300_v34  ;;  %v499_v62 = vmul.f32 %v2913_v53, %v299_v25 }
  0xfe   : > { %v1032_v47 = vmax.f32 %v776_v33, 0.0  ;;  %v303_v33 = vld [vmem:[%s2850_s12 + $0x150] sm:$0xff] }
  0xff   : > { %1665 = vmatmul.mubr.bf16.gmra.mrb[52].mxu1 %v1189_v40  ;;  %1954 = vmatmul.mubr.bf16.gmra.mrb[52].mxu0 %v1191_v41  ;;  %v486_v40 = vmul.f32 %v2892_v28, %v295_v21  ;;  %v490_v41 = vmul.f32 %v2892_v28, %v296_v27  ;;  %v1203_v21 = vpack.c.bf16 %v1015_v6, %v1011_v5  ;;  %v1021_v27 = vmax.f32 %v765_v13, 0.0 }
 0x100   : > { %1672 = vmatprep.mubr.bf16.mxu1 %v1194_v44  ;;  %1961 = vmatprep.mubr.bf16.mxu0 %v1196_v56  ;;  %v1197_v44 = vpack.c.bf16 %v1005_v22, %v1001_v20  ;;  %v774_v20 = vadd.f32 %v2894_v30, %v496_v8  ;;  %v1206_v22 = vpack.c.bf16 %v1022_v9, %v1018_v7  ;;  %v1025_v5 = vmax.f32 %v769_v50, 0.0 }
 0x101   : > { %v764_v56 = vadd.f32 %v2896_v31, %v486_v40  ;;  %v768_v57 = vadd.f32 %v2896_v31, %v490_v41  ;;  %v493_v40 = vmul.f32 %v2916_v54, %v297_v52  ;;  %v497_v41 = vmul.f32 %v2916_v54, %v298_v0 }
 0x102   : > { %v1030_v39 = vmax.f32 %v774_v20, 0.0  ;;  %v782_v0 = vadd.f32 %v2894_v30, %v504_v43  ;;  %v1029_v6 = vmax.f32 %v773_v51, 0.0  ;;  %v505_v7 = vmul.f32 %v2916_v54, %v300_v34 }
 0x103   : > { %v1020_v10 = vmax.f32 %v764_v56, 0.0  ;;  %v1024_v11 = vmax.f32 %v768_v57, 0.0  ;;  %v771_v55 = vadd.f32 %v2927_v63, %v493_v40  ;;  %v775_v56 = vadd.f32 %v2927_v63, %v497_v41 }
 0x104   : > { %v778_v57 = vadd.f32 %v2894_v30, %v500_v42  ;;  %v508_v8 = vmul.f32 %v2887_v26, %v301_v58  ;;  %v1038_v13 = vmax.f32 %v782_v0, 0.0  ;;  %v777_v16 = vadd.f32 %v2922_v60, %v499_v62  ;;  %v305_v62 = vld [vmem:[%s2850_s12 + $0x160] sm:$0xff] }
 0x105   : > { %v1208_v23 = vpack.c.bf16 %v1024_v11, %v1020_v10  ;;  %v1027_v9 = vmax.f32 %v771_v55, 0.0  ;;  %v1031_v10 = vmax.f32 %v775_v56, 0.0  ;;  %v507_v41 = vmul.f32 %v2913_v53, %v301_v58 }
 0x106   : > { %v1034_v11 = vmax.f32 %v778_v57, 0.0 }
 0x107   : > { %1673 = vmatmul.mubr.bf16.gmra.mrb[56].mxu1 %v1193_v15  ;;  %1962 = vmatmul.mubr.bf16.gmra.mrb[56].mxu0 %v1195_v17  ;;  %v494_v15 = vmul.f32 %v2892_v28, %v297_v52  ;;  %v767_v17 = vadd.f32 %v2927_v63, %v489_v3  ;;  %v503_v3 = vmul.f32 %v2913_v53, %v300_v34 }
 0x108   : > { %1680 = vmatprep.mubr.bf16.mxu1 %v1198_v18  ;;  %1969 = vmatprep.mubr.bf16.mxu0 %v1200_v19  ;;  %v770_v18 = vadd.f32 %v2894_v30, %v492_v4  ;;  %v1201_v19 = vpack.c.bf16 %v1013_v2, %v1009_v1  ;;  %v302_v1 = vld [vmem:[%s2850_s12 + $0x148] sm:$0xff]  ;;  %v501_v4 = vmul.f32 %v2916_v54, %v299_v25 }
 0x109   : > { %v772_v32 = vadd.f32 %v2896_v31, %v494_v15  ;;  %v1023_v35 = vmax.f32 %v767_v17, 0.0  ;;  %v512_v12 = vmul.f32 %v2887_v26, %v302_v1  ;;  %v781_v17 = vadd.f32 %v2922_v60, %v503_v3 }
 0x10a   : > { %v1026_v36 = vmax.f32 %v770_v18, 0.0  ;;  %v779_v18 = vadd.f32 %v2927_v63, %v501_v4  ;;  %v514_v20 = vmul.f32 %v2892_v28, %v302_v1  ;;  %v511_v42 = vmul.f32 %v2913_v53, %v302_v1 }
 0x10b   : > { %v1028_v46 = vmax.f32 %v772_v32, 0.0  ;;  %v1207_v49 = vpack.c.bf16 %v1023_v35, %v1019_v29  ;;  %v1033_v32 = vmax.f32 %v777_v16, 0.0  ;;  %v785_v56 = vadd.f32 %v2922_v60, %v507_v41 }
 0x10c   : > { %v1210_v52 = vpack.c.bf16 %v1030_v39, %v1026_v36  ;;  %v1035_v35 = vmax.f32 %v779_v18, 0.0  ;;  %v792_v37 = vadd.f32 %v2896_v31, %v514_v20  ;;  %v789_v57 = vadd.f32 %v2922_v60, %v511_v42 }
 0x10d   : > { %v1212_v2 = vpack.c.bf16 %v1032_v47, %v1028_v46  ;;  %v516_v46 = vmul.f32 %v2887_v26, %v303_v33  ;;  %v520_v47 = vmul.f32 %v2887_v26, %v304_v38  ;;  %v515_v4 = vmul.f32 %v2913_v53, %v303_v33 }
 0x10e   : > { %v1048_v51 = vmax.f32 %v792_v37, 0.0 }
 0x10f   : > { %1681 = vmatmul.mubr.bf16.gmra.mrb[60].mxu1 %v1197_v44  ;;  %1970 = vmatmul.mubr.bf16.gmra.mrb[60].mxu0 %v1199_v45  ;;  %v502_v44 = vmul.f32 %v2892_v28, %v299_v25  ;;  %v506_v45 = vmul.f32 %v2892_v28, %v300_v34  ;;  %v1211_v25 = vpack.c.bf16 %v1031_v10, %v1027_v9  ;;  %v1037_v34 = vmax.f32 %v781_v17, 0.0 }
 0x110   : > { %1688 = vmatprep.mubr.bf16.mxu1 %v1202_v48  ;;  %1977 = vmatprep.mubr.bf16.mxu0 %v1204_v59  ;;  %v1205_v48 = vpack.c.bf16 %v1021_v27, %v1017_v24  ;;  %v790_v24 = vadd.f32 %v2894_v30, %v512_v12  ;;  %v1214_v27 = vpack.c.bf16 %v1038_v13, %v1034_v11  ;;  %v1041_v9 = vmax.f32 %v785_v56, 0.0 }
 0x111   : > { %v780_v59 = vadd.f32 %v2896_v31, %v502_v44  ;;  %v784_v61 = vadd.f32 %v2896_v31, %v506_v45  ;;  %v509_v44 = vmul.f32 %v2916_v54, %v301_v58  ;;  %v513_v45 = vmul.f32 %v2916_v54, %v302_v1 }
 0x112   : > { %v1046_v43 = vmax.f32 %v790_v24, 0.0  ;;  %v798_v1 = vadd.f32 %v2894_v30, %v520_v47  ;;  %v1045_v10 = vmax.f32 %v789_v57, 0.0  ;;  %v521_v11 = vmul.f32 %v2916_v54, %v304_v38 }
 0x113   : > { %v1036_v14 = vmax.f32 %v780_v59, 0.0  ;;  %v1040_v15 = vmax.f32 %v784_v61, 0.0  ;;  %v787_v0 = vadd.f32 %v2927_v63, %v509_v44  ;;  %v791_v59 = vadd.f32 %v2927_v63, %v513_v45 }
 0x114   : > { %v794_v61 = vadd.f32 %v2894_v30, %v516_v46  ;;  %v524_v12 = vmul.f32 %v2887_v26, %v305_v62  ;;  %v1054_v17 = vmax.f32 %v798_v1, 0.0  ;;  %v793_v20 = vadd.f32 %v2922_v60, %v515_v4 }
 0x115   : > { %v1216_v29 = vpack.c.bf16 %v1040_v15, %v1036_v14  ;;  %v1043_v13 = vmax.f32 %v787_v0, 0.0  ;;  %v1047_v14 = vmax.f32 %v791_v59, 0.0  ;;  %v525_v47 = vmul.f32 %v2916_v54, %v305_v62 }
 0x116   : > { %v1050_v15 = vmax.f32 %v794_v61, 0.0  ;;  %v1049_v37 = vmax.f32 %v793_v20, 0.0 }
 0x117   : > { %1689 = vmatmul.mubr.bf16.gmra.mrb[64].mxu1 %v1201_v19  ;;  %1978 = vmatmul.mubr.bf16.gmra.mrb[64].mxu0 %v1203_v21  ;;  %v510_v19 = vmul.f32 %v2892_v28, %v301_v58  ;;  %v783_v21 = vadd.f32 %v2927_v63, %v505_v7  ;;  %v519_v7 = vmul.f32 %v2913_v53, %v304_v38 }
 0x118   : > { %1696 = vmatprep.mubr.bf16.mxu1 %v1206_v22  ;;  %1985 = vmatprep.mubr.bf16.mxu0 %v1208_v23  ;;  %v786_v22 = vadd.f32 %v2894_v30, %v508_v8  ;;  %v1209_v23 = vpack.c.bf16 %v1029_v6, %v1025_v5  ;;  %v306_v5 = vld [vmem:[%s2850_s12 + $0x168] sm:$0xff]  ;;  %v517_v8 = vmul.f32 %v2916_v54, %v303_v33 }
 0x119   : > { %v788_v36 = vadd.f32 %v2896_v31, %v510_v19  ;;  %v1039_v39 = vmax.f32 %v783_v21, 0.0  ;;  %v528_v16 = vmul.f32 %v2887_v26, %v306_v5  ;;  %v797_v21 = vadd.f32 %v2922_v60, %v519_v7 }
 0x11a   : > { %v1042_v40 = vmax.f32 %v786_v22, 0.0  ;;  %v795_v22 = vadd.f32 %v2927_v63, %v517_v8  ;;  %v530_v24 = vmul.f32 %v2892_v28, %v306_v5  ;;  %v527_v46 = vmul.f32 %v2913_v53, %v306_v5 }
 0x11b   : > { %v1044_v50 = vmax.f32 %v788_v36, 0.0  ;;  %v1215_v55 = vpack.c.bf16 %v1039_v39, %v1035_v35  ;;  %v1222_v35 = vpack.c.bf16 %v1054_v17, %v1050_v15  ;;  %v1053_v39 = vmax.f32 %v797_v21, 0.0 }
 0x11c   : > { %v1218_v58 = vpack.c.bf16 %v1046_v43, %v1042_v40  ;;  %v1051_v40 = vmax.f32 %v795_v22, 0.0  ;;  %v808_v42 = vadd.f32 %v2896_v31, %v530_v24  ;;  %v308_v43 = vld [vmem:[%s2850_s12 + $0x178] sm:$0xff]  ;;  %v805_v61 = vadd.f32 %v2922_v60, %v527_v46 }
 0x11d   : > { %v1220_v6 = vpack.c.bf16 %v1048_v51, %v1044_v50  ;;  %v529_v50 = vmul.f32 %v2916_v54, %v306_v5  ;;  %v538_v56 = vmul.f32 %v2892_v28, %v308_v43  ;;  %v1221_v0 = vpack.c.bf16 %v1053_v39, %v1049_v37  ;;  %v309_v5 = vld [vmem:[%s2850_s12 + $0x180] sm:$0xff] }
 0x11e   : > { %v1061_v15 = vmax.f32 %v805_v61, 0.0  ;;  %v540_v17 = vmul.f32 %v2887_v26, %v309_v5  ;;  %v542_v21 = vmul.f32 %v2892_v28, %v309_v5 }
 0x11f   : > { %1697 = vmatmul.mubr.bf16.gmra.mrb[68].mxu1 %v1205_v48  ;;  %1986 = vmatmul.mubr.bf16.gmra.mrb[68].mxu0 %v1207_v49  ;;  %v518_v48 = vmul.f32 %v2892_v28, %v303_v33  ;;  %v522_v49 = vmul.f32 %v2892_v28, %v304_v38  ;;  %v523_v33 = vmul.f32 %v2913_v53, %v305_v62  ;;  %v307_v38 = vld [vmem:[%s2850_s12 + $0x170] sm:$0xff] }
 0x120   : > { %1704 = vmatprep.mubr.bf16.mxu1 %v1210_v52  ;;  %1993 = vmatprep.mubr.bf16.mxu0 %v1212_v2  ;;  %v1213_v52 = vpack.c.bf16 %v1037_v34, %v1033_v32  ;;  %v806_v32 = vadd.f32 %v2894_v30, %v528_v16  ;;  %v1219_v34 = vpack.c.bf16 %v1047_v14, %v1043_v13 }
 0x121   : > { %v796_v2 = vadd.f32 %v2896_v31, %v518_v48  ;;  %v800_v3 = vadd.f32 %v2896_v31, %v522_v49  ;;  %v801_v49 = vadd.f32 %v2922_v60, %v523_v33  ;;  %v532_v51 = vmul.f32 %v2887_v26, %v307_v38 }
 0x122   : > { %v1062_v48 = vmax.f32 %v806_v32, 0.0  ;;  %v533_v13 = vmul.f32 %v2916_v54, %v307_v38  ;;  %v537_v14 = vmul.f32 %v2916_v54, %v308_v43  ;;  %v820_v37 = vadd.f32 %v2896_v31, %v542_v21 }
 0x123   : > { %v1052_v18 = vmax.f32 %v796_v2, 0.0  ;;  %v1056_v19 = vmax.f32 %v800_v3, 0.0  ;;  %v1057_v2 = vmax.f32 %v801_v49, 0.0  ;;  %v807_v3 = vadd.f32 %v2927_v63, %v529_v50 }
 0x124   : > { %v810_v4 = vadd.f32 %v2894_v30, %v532_v51  ;;  %v811_v32 = vadd.f32 %v2927_v63, %v533_v13  ;;  %v815_v33 = vadd.f32 %v2927_v63, %v537_v14 }
 0x125   : > { %v1224_v36 = vpack.c.bf16 %v1056_v19, %v1052_v18  ;;  %v1063_v19 = vmax.f32 %v807_v3, 0.0 }
 0x126   : > { %v1066_v20 = vmax.f32 %v810_v4, 0.0  ;;  %v1071_v46 = vmax.f32 %v815_v33, 0.0 }
 0x127   : > { %1705 = vmatmul.mubr.bf16.gmra.mrb[72].mxu1 %v1209_v23  ;;  %1994 = vmatmul.mubr.bf16.gmra.mrb[72].mxu0 %v1211_v25  ;;  %v526_v23 = vmul.f32 %v2892_v28, %v305_v62  ;;  %v799_v25 = vadd.f32 %v2927_v63, %v521_v11  ;;  %v803_v62 = vadd.f32 %v2927_v63, %v525_v47 }
 0x128   : > { %1712 = vmatprep.mubr.bf16.mxu1 %v1214_v27  ;;  %2001 = vmatprep.mubr.bf16.mxu0 %v1216_v29  ;;  %v802_v27 = vadd.f32 %v2894_v30, %v524_v12  ;;  %v1217_v29 = vpack.c.bf16 %v1045_v10, %v1041_v9  ;;  %v816_v9 = vadd.f32 %v2896_v31, %v538_v56 }
 0x129   : > { %v804_v41 = vadd.f32 %v2896_v31, %v526_v23  ;;  %v1055_v44 = vmax.f32 %v799_v25, 0.0  ;;  %v531_v10 = vmul.f32 %v2913_v53, %v307_v38  ;;  %v535_v12 = vmul.f32 %v2913_v53, %v308_v43 }
 0x12a   : > { %v1058_v45 = vmax.f32 %v802_v27, 0.0  ;;  %v1059_v16 = vmax.f32 %v803_v62, 0.0  ;;  %v1072_v25 = vmax.f32 %v816_v9, 0.0  ;;  %v539_v47 = vmul.f32 %v2913_v53, %v309_v5 }
 0x12b   : > { %v1060_v57 = vmax.f32 %v804_v41, 0.0  ;;  %v1223_v59 = vpack.c.bf16 %v1055_v44, %v1051_v40  ;;  %v809_v27 = vadd.f32 %v2922_v60, %v531_v10  ;;  %v314_v10 = vld [vmem:[%s2850_s12 + $0x1a8] sm:$0xff] }
 0x12c   : > { %v1226_v1 = vpack.c.bf16 %v1062_v48, %v1058_v45  ;;  %v1227_v39 = vpack.c.bf16 %v1063_v19, %v1059_v16  ;;  %v1067_v45 = vmax.f32 %v811_v32, 0.0  ;;  %v312_v48 = vld [vmem:[%s2850_s12 + $0x198] sm:$0xff] }
 0x12d   : > { %v554_v61 = vmul.f32 %v2892_v28, %v312_v48 }
 0x12f   : > { %1713 = vmatmul.mubr.bf16.gmra.mrb[76].mxu1 %v1213_v52  ;;  %2002 = vmatmul.mubr.bf16.gmra.mrb[76].mxu0 %v1215_v55  ;;  %v536_v52 = vmul.f32 %v2887_v26, %v308_v43  ;;  %v534_v55 = vmul.f32 %v2892_v28, %v307_v38  ;;  %v311_v43 = vld [vmem:[%s2850_s12 + $0x190] sm:$0xff]  ;;  %v832_v13 = vadd.f32 %v2896_v31, %v554_v61 }
 0x130   : > { %1720 = vmatprep.mubr.bf16.mxu1 %v1218_v58  ;;  %2009 = vmatprep.mubr.bf16.mxu0 %v1220_v6  ;;  %v1064_v58 = vmax.f32 %v808_v42, 0.0  ;;  %v310_v6 = vld [vmem:[%s2850_s12 + $0x188] sm:$0xff]  ;;  %v1065_v42 = vmax.f32 %v809_v27, 0.0  ;;  %v547_v14 = vmul.f32 %v2913_v53, %v311_v43  ;;  %v549_v16 = vmul.f32 %v2916_v54, %v311_v43 }
 0x131   : > { %v814_v7 = vadd.f32 %v2894_v30, %v536_v52  ;;  %v812_v8 = vadd.f32 %v2896_v31, %v534_v55  ;;  %v544_v18 = vmul.f32 %v2887_v26, %v310_v6  ;;  %v546_v22 = vmul.f32 %v2892_v28, %v310_v6 }
 0x132   : > { %v1228_v11 = vpack.c.bf16 %v1064_v58, %v1060_v57  ;;  %v543_v51 = vmul.f32 %v2913_v53, %v310_v6  ;;  %v541_v52 = vmul.f32 %v2916_v54, %v309_v5  ;;  %v1076_v55 = vmax.f32 %v820_v37, 0.0  ;;  %v313_v5 = vld [vmem:[%s2850_s12 + $0x1a0] sm:$0xff] }
 0x133   : > { %v1070_v23 = vmax.f32 %v814_v7, 0.0  ;;  %v1068_v24 = vmax.f32 %v812_v8, 0.0  ;;  %v824_v38 = vadd.f32 %v2896_v31, %v546_v22  ;;  %v545_v57 = vmul.f32 %v2916_v54, %v310_v6 }
 0x134   : > { %v548_v58 = vmul.f32 %v2887_v26, %v311_v43  ;;  %v821_v3 = vadd.f32 %v2922_v60, %v543_v51  ;;  %v819_v4 = vadd.f32 %v2927_v63, %v541_v52  ;;  %v560_v22 = vmul.f32 %v2887_v26, %v314_v10 }
 0x135   : > { %v1230_v40 = vpack.c.bf16 %v1070_v23, %v1066_v20  ;;  %v1232_v41 = vpack.c.bf16 %v1072_v25, %v1068_v24  ;;  %v1080_v56 = vmax.f32 %v824_v38, 0.0  ;;  %v823_v8 = vadd.f32 %v2927_v63, %v545_v57 }
 0x136   : > { %v826_v9 = vadd.f32 %v2894_v30, %v548_v58  ;;  %v1077_v20 = vmax.f32 %v821_v3, 0.0  ;;  %v1075_v21 = vmax.f32 %v819_v4, 0.0  ;;  %v558_v25 = vmul.f32 %v2892_v28, %v313_v5 }
 0x137   : > { %1721 = vmatmul.mubr.bf16.gmra.mrb[80].mxu1 %v1217_v29  ;;  %2010 = vmatmul.mubr.bf16.gmra.mrb[80].mxu0 %v1219_v34  ;;  %v813_v29 = vadd.f32 %v2922_v60, %v535_v12  ;;  %v818_v34 = vadd.f32 %v2894_v30, %v540_v17  ;;  %v1236_v7 = vpack.c.bf16 %v1080_v56, %v1076_v55  ;;  %v1079_v23 = vmax.f32 %v823_v8, 0.0  ;;  %v316_v55 = vld [vmem:[%s2850_s12 + $0x1b8] sm:$0xff] }
 0x138   : > { %1728 = vmatprep.mubr.bf16.mxu1 %v1222_v35  ;;  %2017 = vmatprep.mubr.bf16.mxu0 %v1224_v36  ;;  %v822_v35 = vadd.f32 %v2894_v30, %v544_v18  ;;  %v1225_v36 = vpack.c.bf16 %v1061_v15, %v1057_v2  ;;  %v817_v2 = vadd.f32 %v2922_v60, %v539_v47  ;;  %v1082_v24 = vmax.f32 %v826_v9, 0.0 }
 0x139   : > { %v1069_v44 = vmax.f32 %v813_v29, 0.0  ;;  %v1074_v49 = vmax.f32 %v818_v34, 0.0  ;;  %v551_v15 = vmul.f32 %v2913_v53, %v312_v48  ;;  %v553_v17 = vmul.f32 %v2916_v54, %v312_v48 }
 0x13a   : > { %v1078_v50 = vmax.f32 %v822_v35, 0.0  ;;  %v556_v18 = vmul.f32 %v2887_v26, %v313_v5  ;;  %v1073_v19 = vmax.f32 %v817_v2, 0.0  ;;  %v562_v27 = vmul.f32 %v2892_v28, %v314_v10 }
 0x13b   : > { %v1229_v62 = vpack.c.bf16 %v1069_v44, %v1065_v42  ;;  %v1088_v33 = vmax.f32 %v832_v13, 0.0  ;;  %v825_v34 = vadd.f32 %v2922_v60, %v547_v14  ;;  %v829_v35 = vadd.f32 %v2922_v60, %v551_v15  ;;  %v318_v15 = vld [vmem:[%s2850_s12 + $0x1c8] sm:$0xff] }
 0x13c   : > { %v1234_v6 = vpack.c.bf16 %v1078_v50, %v1074_v49  ;;  %v831_v37 = vadd.f32 %v2927_v63, %v553_v17  ;;  %v834_v38 = vadd.f32 %v2894_v30, %v556_v18  ;;  %v840_v42 = vadd.f32 %v2896_v31, %v562_v27 }
 0x13d   : > { %v1235_v44 = vpack.c.bf16 %v1079_v23, %v1075_v21  ;;  %v1081_v47 = vmax.f32 %v825_v34, 0.0  ;;  %v1085_v49 = vmax.f32 %v829_v35, 0.0  ;;  %v559_v57 = vmul.f32 %v2913_v53, %v314_v10 }
 0x13e   : > { %v1087_v51 = vmax.f32 %v831_v37, 0.0  ;;  %v1090_v52 = vmax.f32 %v834_v38, 0.0  ;;  %v557_v58 = vmul.f32 %v2916_v54, %v313_v5  ;;  %v1096_v61 = vmax.f32 %v840_v42, 0.0 }
 0x13f   : > { %1729 = vmatmul.mubr.bf16.gmra.mrb[84].mxu1 %v1221_v0  ;;  %2018 = vmatmul.mubr.bf16.gmra.mrb[84].mxu0 %v1223_v59  ;;  %v552_v0 = vmul.f32 %v2887_v26, %v312_v48  ;;  %v550_v59 = vmul.f32 %v2892_v28, %v311_v43  ;;  %v555_v43 = vmul.f32 %v2913_v53, %v313_v5  ;;  %v315_v48 = vld [vmem:[%s2850_s12 + $0x1b0] sm:$0xff] }
 0x140   : > { %1736 = vmatprep.mubr.bf16.mxu1 %v1226_v1  ;;  %2025 = vmatprep.mubr.bf16.mxu0 %v1228_v11  ;;  %v1231_v1 = vpack.c.bf16 %v1071_v46, %v1067_v45  ;;  %v568_v2 = vmul.f32 %v2887_v26, %v316_v55  ;;  %v566_v3 = vmul.f32 %v2892_v28, %v315_v48 }
 0x141   : > { %v830_v11 = vadd.f32 %v2894_v30, %v552_v0  ;;  %v828_v12 = vadd.f32 %v2896_v31, %v550_v59  ;;  %v561_v0 = vmul.f32 %v2916_v54, %v314_v10  ;;  %v570_v4 = vmul.f32 %v2892_v28, %v316_v55  ;;  %v317_v10 = vld [vmem:[%s2850_s12 + $0x1c0] sm:$0xff] }
 0x142   : > { %v1237_v5 = vpack.c.bf16 %v1085_v49, %v1081_v47  ;;  %v835_v8 = vadd.f32 %v2927_v63, %v557_v58  ;;  %v844_v17 = vadd.f32 %v2896_v31, %v566_v3  ;;  %v565_v21 = vmul.f32 %v2916_v54, %v315_v48 }
 0x143   : > { %v1086_v29 = vmax.f32 %v830_v11, 0.0  ;;  %v1084_v32 = vmax.f32 %v828_v12, 0.0  ;;  %v839_v9 = vadd.f32 %v2927_v63, %v561_v0  ;;  %v848_v18 = vadd.f32 %v2896_v31, %v570_v4 }
 0x144   : > { %v572_v23 = vmul.f32 %v2887_v26, %v317_v10  ;;  %v578_v34 = vmul.f32 %v2892_v28, %v318_v15  ;;  %v575_v49 = vmul.f32 %v2913_v53, %v318_v15 }
 0x145   : > { %v1238_v45 = vpack.c.bf16 %v1086_v29, %v1082_v24  ;;  %v1240_v46 = vpack.c.bf16 %v1088_v33, %v1084_v32  ;;  %v1095_v27 = vmax.f32 %v839_v9, 0.0  ;;  %v576_v29 = vmul.f32 %v2887_v26, %v318_v15 }
 0x146   : > { %v574_v33 = vmul.f32 %v2892_v28, %v317_v10  ;;  %v1104_v37 = vmax.f32 %v848_v18, 0.0  ;;  %v850_v42 = vadd.f32 %v2894_v30, %v572_v23  ;;  %v856_v47 = vadd.f32 %v2896_v31, %v578_v34 }
 0x147   : > { %1737 = vmatmul.mubr.bf16.gmra.mrb[88].mxu1 %v1225_v36  ;;  %2026 = vmatmul.mubr.bf16.gmra.mrb[88].mxu0 %v1227_v39  ;;  %v827_v36 = vadd.f32 %v2927_v63, %v549_v16  ;;  %v838_v39 = vadd.f32 %v2894_v30, %v560_v22  ;;  %v846_v16 = vadd.f32 %v2894_v30, %v568_v2 }
 0x148   : > { %1744 = vmatprep.mubr.bf16.mxu1 %v1230_v40  ;;  %2033 = vmatprep.mubr.bf16.mxu0 %v1232_v41  ;;  %v1233_v40 = vpack.c.bf16 %v1077_v20, %v1073_v19  ;;  %v836_v41 = vadd.f32 %v2896_v31, %v558_v25  ;;  %v563_v19 = vmul.f32 %v2913_v53, %v315_v48  ;;  %v1091_v25 = vmax.f32 %v835_v8, 0.0  ;;  %v3447_v8 = vld [vmem:[%s3691_s4] ss:$0 sm:$0xff] }
 0x149   : > { %v1083_v50 = vmax.f32 %v827_v36, 0.0  ;;  %v1094_v56 = vmax.f32 %v838_v39, 0.0  ;;  %v567_v20 = vmul.f32 %v2913_v53, %v316_v55  ;;  %v569_v22 = vmul.f32 %v2916_v54, %v316_v55 }
 0x14a   : > { %v1092_v59 = vmax.f32 %v836_v41, 0.0  ;;  %v1102_v35 = vmax.f32 %v846_v16, 0.0  ;;  %v1100_v36 = vmax.f32 %v844_v17, 0.0  ;;  %v841_v38 = vadd.f32 %v2922_v60, %v563_v19 }
 0x14b   : > { %v1242_v11 = vpack.c.bf16 %v1094_v56, %v1090_v52  ;;  %v845_v39 = vadd.f32 %v2922_v60, %v567_v20  ;;  %v847_v41 = vadd.f32 %v2927_v63, %v569_v22 }
 0x14c   : > { %v1244_v12 = vpack.c.bf16 %v1096_v61, %v1092_v59  ;;  %v1248_v55 = vpack.c.bf16 %v1104_v37, %v1100_v36  ;;  %v1097_v56 = vmax.f32 %v841_v38, 0.0  ;;  %v1106_v61 = vmax.f32 %v850_v42, 0.0  ;;  %v3461_v36 = vld [vmem:[%s2850_s12 + $0x1e8] sm:$0xff] }
 0x14d   : > { %v1101_v58 = vmax.f32 %v845_v39, 0.0  ;;  %v1103_v59 = vmax.f32 %v847_v41, 0.0 }
 0x14f   : > { %1745 = vmatmul.mubr.bf16.gmra.mrb[92].mxu1 %v1229_v62  ;;  %2034 = vmatmul.mubr.bf16.gmra.mrb[92].mxu0 %v1231_v1  ;;  %v833_v62 = vadd.f32 %v2922_v60, %v555_v43  ;;  %v564_v1 = vmul.f32 %v2887_v26, %v315_v48  ;;  %v571_v48 = vmul.f32 %v2913_v53, %v317_v10 }
 0x150   : > { %1752 = vmatprep.mubr.bf16.mxu1 %v1234_v6  ;;  %2041 = vmatprep.mubr.bf16.mxu0 %v1236_v7  ;;  %v1239_v6 = vpack.c.bf16 %v1087_v51, %v1083_v50  ;;  %v837_v7 = vadd.f32 %v2922_v60, %v559_v57  ;;  %v319_v50 = vld [vmem:[%s2850_s12 + $0x1d0] sm:$0xff]  ;;  %v320_v51 = vld [vmem:[%s2850_s12 + $0x1d8] sm:$0xff]  ;;  %v573_v57 = vmul.f32 %v2916_v54, %v317_v10 }
 0x151   : > { %v1089_v13 = vmax.f32 %v833_v62, 0.0  ;;  %v842_v14 = vadd.f32 %v2894_v30, %v564_v1  ;;  %v577_v1 = vmul.f32 %v2916_v54, %v318_v15  ;;  %v580_v2 = vmul.f32 %v2887_v26, %v319_v50 }
 0x152   : > { %v1093_v24 = vmax.f32 %v837_v7, 0.0  ;;  %v584_v3 = vmul.f32 %v2887_v26, %v320_v51  ;;  %v853_v7 = vadd.f32 %v2922_v60, %v575_v49  ;;  %v851_v9 = vadd.f32 %v2927_v63, %v573_v57 }
 0x153   : > { %v1098_v32 = vmax.f32 %v842_v14, 0.0  ;;  %v582_v10 = vmul.f32 %v2892_v28, %v319_v50  ;;  %v855_v16 = vadd.f32 %v2927_v63, %v577_v1  ;;  %v858_v17 = vadd.f32 %v2894_v30, %v580_v2 }
 0x154   : > { %v1241_v43 = vpack.c.bf16 %v1093_v24, %v1089_v13  ;;  %v862_v18 = vadd.f32 %v2894_v30, %v584_v3  ;;  %v579_v24 = vmul.f32 %v2913_v53, %v319_v50  ;;  %v583_v41 = vmul.f32 %v2913_v53, %v320_v51 }
 0x155   : > { %v1246_v52 = vpack.c.bf16 %v1102_v35, %v1098_v32  ;;  %v1107_v32 = vmax.f32 %v851_v9, 0.0  ;;  %v321_v35 = vld [vmem:[%s2850_s12 + $0x1e0] sm:$0xff]  ;;  %v581_v42 = vmul.f32 %v2916_v54, %v319_v50  ;;  %v592_v50 = vmul.f32 %v2887_v26, %v3461_v36 }
 0x156   : > { %v3473_v49 = vadd.f32 %v2922_v60, %v579_v24  ;;  %v594_v57 = vmul.f32 %v2892_v28, %v3461_v36 }
 0x157   : > { %1753 = vmatmul.mubr.bf16.gmra.mrb[96].mxu1 %v1233_v40  ;;  %2042 = vmatmul.mubr.bf16.gmra.mrb[96].mxu0 %v1235_v44  ;;  %v843_v40 = vadd.f32 %v2927_v63, %v565_v21  ;;  %v1243_v44 = vpack.c.bf16 %v1095_v27, %v1091_v25 }
 0x158   : > { %1760 = vmatprep.mubr.bf16.mxu1 %v1238_v45  ;;  %2049 = vmatprep.mubr.bf16.mxu0 %v1240_v46  ;;  %v854_v45 = vadd.f32 %v2894_v30, %v576_v29  ;;  %v852_v46 = vadd.f32 %v2896_v31, %v574_v33  ;;  %v1109_v29 = vmax.f32 %v853_v7, 0.0  ;;  %v860_v33 = vadd.f32 %v2896_v31, %v582_v10 }
 0x159   : > { %v1099_v0 = vmax.f32 %v843_v40, 0.0  ;;  %v870_v7 = vadd.f32 %v2894_v30, %v592_v50 }
 0x15a   : > { %v1110_v62 = vmax.f32 %v854_v45, 0.0  ;;  %v1108_v4 = vmax.f32 %v852_v46, 0.0  ;;  %v1114_v45 = vmax.f32 %v858_v17, 0.0  ;;  %v1118_v46 = vmax.f32 %v862_v18, 0.0 }
 0x15b   : > { %v1247_v13 = vpack.c.bf16 %v1103_v59, %v1099_v0  ;;  %v859_v0 = vadd.f32 %v2927_v63, %v581_v42 }
 0x15c   : > { %v1250_v15 = vpack.c.bf16 %v1110_v62, %v1106_v61 }
 0x15f   : > { %1761 = vmatmul.mubr.bf16.gmra.mrb[100].mxu1 %v1237_v5  ;;  %2050 = vmatmul.mubr.bf16.gmra.mrb[100].mxu0 %v1239_v6  ;;  %v1112_v5 = vmax.f32 %v856_v47, 0.0  ;;  %v849_v6 = vadd.f32 %v2922_v60, %v571_v48  ;;  %v585_v47 = vmul.f32 %v2916_v54, %v320_v51 }
 0x160   : > { %1768 = vmatprep.mubr.bf16.mxu1 %v1242_v11  ;;  %2057 = vmatprep.mubr.bf16.mxu0 %v1244_v12  ;;  %v586_v11 = vmul.f32 %v2892_v28, %v320_v51  ;;  %v1245_v12 = vpack.c.bf16 %v1101_v58, %v1097_v56  ;;  %v590_v56 = vmul.f32 %v2892_v28, %v321_v35 }
 0x161   : > { %v1252_v22 = vpack.c.bf16 %v1112_v5, %v1108_v4  ;;  %v1105_v23 = vmax.f32 %v849_v6, 0.0  ;;  %v861_v58 = vadd.f32 %v2922_v60, %v583_v41  ;;  %v863_v1 = vadd.f32 %v2927_v63, %v585_v47 }
 0x162   : > { %v864_v34 = vadd.f32 %v2896_v31, %v586_v11  ;;  %v1254_v5 = vpack.c.bf16 %v1118_v46, %v1114_v45 }
 0x163   : > { %v1249_v61 = vpack.c.bf16 %v1109_v29, %v1105_v23  ;;  %v1119_v24 = vmax.f32 %v863_v1, 0.0  ;;  %v589_v29 = vmul.f32 %v2916_v54, %v321_v35 }
 0x164   : > { %v1120_v51 = vmax.f32 %v864_v34, 0.0  ;;  %v1126_v34 = vmax.f32 %v870_v7, 0.0 }
 0x167   : > { %1769 = vmatmul.mubr.bf16.gmra.mrb[104].mxu1 %v1241_v43  ;;  %2058 = vmatmul.mubr.bf16.gmra.mrb[104].mxu0 %v1243_v44  ;;  %v1111_v44 = vmax.f32 %v855_v16, 0.0 }
 0x168   : > { %1776 = vmatprep.mubr.bf16.mxu1 %v1246_v52  ;;  %2065 = vmatprep.mubr.bf16.mxu0 %v1248_v55  ;;  %v588_v52 = vmul.f32 %v2887_v26, %v321_v35  ;;  %v1116_v55 = vmax.f32 %v860_v33, 0.0 }
 0x169   : > { %v1251_v62 = vpack.c.bf16 %v1111_v44, %v1107_v32 }
 0x16a   : > { %v1562_v14 = vpop.f32.mrb[0].mxu1  ;;  %v1851_v20 = vpop.f32.mrb[0].mxu0  ;;  %v866_v6 = vadd.f32 %v2894_v30, %v588_v52  ;;  %v1256_v11 = vpack.c.bf16 %v1120_v51, %v1116_v55 }
 0x16b   : > { %v1563_v19 = vadd.f32 %v3447_v8, %v1562_v14  ;;  %v1564_v21 = vpop.f32.mrb[1].mxu1  ;;  %v1853_v25 = vpop.f32.mrb[1].mxu0  ;;  %v872_v14 = vadd.f32 %v2896_v31, %v594_v57 }
 0x16c   : > { %v1565_v27 = vpop.f32.mrb[2].mxu1  ;;  %v1854_v39 = vpop.f32.mrb[2].mxu0  ;;  %v323_v21 = vld [vmem:[%s2850_s12 + $0x1f0] sm:$0xff]  ;;  %v587_v25 = vmul.f32 %v2913_v53, %v321_v35  ;;  %v1122_v33 = vmax.f32 %v866_v6, 0.0 }
 0x16d   : > { %v1852_v37 = vadd.f32 %v1851_v20, %v1563_v19  ;;  %v1566_v38 = vadd.f32 %v3447_v8, %v1565_v27  ;;  %v1567_v40 = vpop.f32.mrb[3].mxu1  ;;  %v1856_v43 = vpop.f32.mrb[3].mxu0  ;;  %v1117_v19 = vmax.f32 %v861_v58, 0.0  ;;  %v1115_v20 = vmax.f32 %v859_v0, 0.0 }
 0x16e   : > { %v591_v27 = vmul.f32 %v2913_v53, %v3461_v36  ;;  %v596_v40 = vmul.f32 %v2887_v26, %v323_v21  ;;  %v598_v35 = vmul.f32 %v2892_v28, %v323_v21  ;;  %v865_v44 = vadd.f32 %v2922_v60, %v587_v25 }
 0x16f   : > { %2106 = vst [vmem:[%s3469_s10] sm:$0xff] %v1852_v37  ;;  %v1855_v48 = vadd.f32 %v1854_v39, %v1566_v38  ;;  %1777 = vmatmul.mubr.bf16.gmra.mrb[108].mxu1 %v1245_v12  ;;  %2066 = vmatmul.mubr.bf16.gmra.mrb[108].mxu0 %v1247_v13  ;;  %v1113_v12 = vmax.f32 %v3473_v49, 0.0  ;;  %v868_v13 = vadd.f32 %v2896_v31, %v590_v56  ;;  %v1128_v39 = vmax.f32 %v872_v14, 0.0 }
 0x170   : > { %1784 = vmatprep.mubr.bf16.mxu1 %v1250_v15  ;;  %2073 = vmatprep.mubr.bf16.mxu0 %v1252_v22  ;;  %v324_v22 = vld [vmem:[%s2850_s12 + $0x1f8] sm:$0xff]  ;;  %v593_v37 = vmul.f32 %v2916_v54, %v3461_v36  ;;  %v869_v45 = vadd.f32 %v2922_v60, %v591_v27  ;;  %v867_v36 = vadd.f32 %v2927_v63, %v589_v29  ;;  %s2601_s12 = scalar_lea.vmem %s3642_s16, 8192 }
 0x171   : > { %2107 = vst [vmem:[%s3469_s10 + $0x8] sm:$0xff] %v1855_v48  ;;  %v1124_v38 = vmax.f32 %v868_v13, 0.0  ;;  %v600_v41 = vmul.f32 %v2887_v26, %v324_v22  ;;  %v602_v42 = vmul.f32 %v2892_v28, %v324_v22  ;;  %v1253_v49 = vpack.c.bf16 %v1117_v19, %v1113_v12  ;;  %p2602_p1 = scmp.ne.s32.totalorder %s3642_s16, %s2601_s12  ;;  %p2609_p13 = scmp.lt.s32.totalorder %s2607_s14, %s2601_s12 }
 0x172   : > { %v1570_v59 = vpop.f32.mrb[4].mxu1  ;;  %v1859_v3 = vpop.f32.mrb[4].mxu0  ;;  %v1255_v52 = vpack.c.bf16 %v1119_v24, %v1115_v20  ;;  %v871_v26 = vadd.f32 %v2927_v63, %v593_v37  ;;  %v1258_v51 = vpack.c.bf16 %v1126_v34, %v1122_v33  ;;  %v874_v56 = vadd.f32 %v2894_v30, %v596_v40 }
 0x173   : > { %v1571_v2 = vadd.f32 %v3447_v8, %v1570_v59  ;;  %v1572_v4 = vpop.f32.mrb[5].mxu1  ;;  %v1861_v9 = vpop.f32.mrb[5].mxu0  ;;  %v1260_v28 = vpack.c.bf16 %v1128_v39, %v1124_v38  ;;  %v878_v57 = vadd.f32 %v2894_v30, %v600_v41  ;;  %v880_v1 = vadd.f32 %v2896_v31, %v602_v42  ;;  %p2603_p4 = pnand %p2602_p1, %p2796_p12  ;;  %p2610_p3 = por %p2609_p13, %p2608_p8 }
 0x174   : > { %v1573_v10 = vpop.f32.mrb[6].mxu1  ;;  %v1862_v17 = vpop.f32.mrb[6].mxu0  ;;  %v1125_v4 = vmax.f32 %v869_v45, 0.0  ;;  %v1127_v7 = vmax.f32 %v871_v26, 0.0  ;;  %v595_v30 = vmul.f32 %v2913_v53, %v323_v21  ;;  %v599_v9 = vmul.f32 %v2913_v53, %v324_v22 }
 0x175   : > { %v1860_v15 = vadd.f32 %v1859_v3, %v1571_v2  ;;  %v1574_v16 = vadd.f32 %v3447_v8, %v1573_v10  ;;  %v1575_v18 = vpop.f32.mrb[7].mxu1  ;;  %v1864_v23 = vpop.f32.mrb[7].mxu0  ;;  %v1121_v3 = vmax.f32 %v865_v44, 0.0  ;;  %v1130_v10 = vmax.f32 %v874_v56, 0.0  ;;  %p2604_p6 = pneg %p2603_p4 }
 0x176   : > { %v597_v12 = vmul.f32 %v2916_v54, %v323_v21  ;;  %v1136_v14 = vmax.f32 %v880_v1, 0.0  ;;  %v873_v53 = vadd.f32 %v2922_v60, %v595_v30  ;;  %v877_v20 = vadd.f32 %v2922_v60, %v599_v9 }
 0x177   : > { %2108 = vst [vmem:[%s3469_s10 + $0x10] sm:$0xff] %v1860_v15  ;;  %v1863_v32 = vadd.f32 %v1862_v17, %v1574_v16  ;;  %1785 = vmatmul.mubr.bf16.gmra.mrb[112].mxu1 %v1249_v61  ;;  %2074 = vmatmul.mubr.bf16.gmra.mrb[112].mxu0 %v1251_v62  ;;  %v876_v62 = vadd.f32 %v2896_v31, %v598_v35  ;;  %p2611_p7 = pnand %p2610_p3, %p2604_p6 }
 0x178   : > { %1792 = vmatprep.mubr.bf16.mxu1 %v1254_v5  ;;  %2081 = vmatprep.mubr.bf16.mxu0 %v1256_v11  ;;  %v1123_v5 = vmax.f32 %v867_v36, 0.0  ;;  %v1134_v11 = vmax.f32 %v878_v57, 0.0  ;;  %v601_v31 = vmul.f32 %v2916_v54, %v324_v22  ;;  %v1257_v19 = vpack.c.bf16 %v1125_v4, %v1121_v3 }
 0x179   : > { %2109 = vst [vmem:[%s3469_s10 + $0x18] sm:$0xff] %v1863_v32  ;;  %v1132_v13 = vmax.f32 %v876_v62, 0.0  ;;  %v875_v54 = vadd.f32 %v2927_v63, %v597_v12  ;;  %v1129_v60 = vmax.f32 %v873_v53, 0.0  ;;  %v1133_v39 = vmax.f32 %v877_v20, 0.0 }
 0x17a   : > { %v1578_v43 = vpop.f32.mrb[8].mxu1  ;;  %v1867_v47 = vpop.f32.mrb[8].mxu0  ;;  %v1259_v21 = vpack.c.bf16 %v1127_v7, %v1123_v5  ;;  %v1262_v25 = vpack.c.bf16 %v1134_v11, %v1130_v10  ;;  %v879_v22 = vadd.f32 %v2927_v63, %v601_v31 }
 0x17b   : > { %v1579_v46 = vadd.f32 %v3447_v8, %v1578_v43  ;;  %v1580_v48 = vpop.f32.mrb[9].mxu1  ;;  %v1869_v50 = vpop.f32.mrb[9].mxu0  ;;  %v1264_v34 = vpack.c.bf16 %v1136_v14, %v1132_v13  ;;  %v1131_v40 = vmax.f32 %v875_v54, 0.0  ;;  %v1261_v44 = vpack.c.bf16 %v1133_v39, %v1129_v60 }
 0x17c   : > { %v1581_v55 = vpop.f32.mrb[10].mxu1  ;;  %v1870_v59 = vpop.f32.mrb[10].mxu0  ;;  %v1135_v41 = vmax.f32 %v879_v22, 0.0 }
 0x17d   : > { %v1868_v58 = vadd.f32 %v1867_v47, %v1579_v46  ;;  %v1582_v0 = vadd.f32 %v3447_v8, %v1581_v55  ;;  %v1583_v61 = vpop.f32.mrb[11].mxu1  ;;  %v1872_v2 = vpop.f32.mrb[11].mxu0 }
 0x17e   : > { %v1263_v46 = vpack.c.bf16 %v1135_v41, %v1131_v40 }
 0x17f   : > { %2110 = vst [vmem:[%s3469_s10 + $0x20] sm:$0xff] %v1868_v58  ;;  %v1871_v6 = vadd.f32 %v1870_v59, %v1582_v0  ;;  %1793 = vmatmul.mubr.bf16.gmra.mrb[116].mxu1 %v1253_v49  ;;  %2082 = vmatmul.mubr.bf16.gmra.mrb[116].mxu0 %v1255_v52 }
 0x180   : > { %1800 = vmatprep.mubr.bf16.mxu1 %v1258_v51  ;;  %2089 = vmatprep.mubr.bf16.mxu0 %v1260_v28 }
 0x181   : > { %2111 = vst [vmem:[%s3469_s10 + $0x28] sm:$0xff] %v1871_v6 }
 0x182   : > { %v1586_v15 = vpop.f32.mrb[12].mxu1  ;;  %v1875_v17 = vpop.f32.mrb[12].mxu0 }
 0x183   : > { %v1587_v16 = vadd.f32 %v3447_v8, %v1586_v15  ;;  %v1588_v18 = vpop.f32.mrb[13].mxu1  ;;  %v1877_v23 = vpop.f32.mrb[13].mxu0 }
 0x184   : > { %v1589_v24 = vpop.f32.mrb[14].mxu1  ;;  %v1878_v32 = vpop.f32.mrb[14].mxu0 }
 0x185   : > { %v1876_v27 = vadd.f32 %v1875_v17, %v1587_v16  ;;  %v1590_v29 = vadd.f32 %v3447_v8, %v1589_v24  ;;  %v1591_v33 = vpop.f32.mrb[15].mxu1  ;;  %v1880_v37 = vpop.f32.mrb[15].mxu0 }
 0x187   : > { %2112 = vst [vmem:[%s3469_s10 + $0x30] sm:$0xff] %v1876_v27  ;;  %v1879_v38 = vadd.f32 %v1878_v32, %v1590_v29  ;;  %1801 = vmatmul.mubr.bf16.gmra.mrb[120].mxu1 %v1257_v19  ;;  %2090 = vmatmul.mubr.bf16.gmra.mrb[120].mxu0 %v1259_v21 }
 0x188   : > { %1808 = vmatprep.mubr.bf16.mxu1 %v1262_v25  ;;  %2097 = vmatprep.mubr.bf16.mxu0 %v1264_v34 }
 0x189   : > { %2113 = vst [vmem:[%s3469_s10 + $0x38] sm:$0xff] %v1879_v38 }
 0x18a   : > { %v1594_v63 = vpop.f32.mrb[16].mxu1  ;;  %v1883_v42 = vpop.f32.mrb[16].mxu0 }
 0x18b   : > { %v1595_v35 = vadd.f32 %v3447_v8, %v1594_v63  ;;  %v1596_v43 = vpop.f32.mrb[17].mxu1  ;;  %v1885_v45 = vpop.f32.mrb[17].mxu0 }
 0x18c   : > { %v1597_v36 = vpop.f32.mrb[18].mxu1  ;;  %v1886_v49 = vpop.f32.mrb[18].mxu0 }
 0x18d   : > { %v1884_v47 = vadd.f32 %v1883_v42, %v1595_v35  ;;  %v1598_v48 = vadd.f32 %v3447_v8, %v1597_v36  ;;  %v1599_v52 = vpop.f32.mrb[19].mxu1  ;;  %v1888_v26 = vpop.f32.mrb[19].mxu0 }
 0x18f   : > { %2114 = vst [vmem:[%s3469_s10 + $0x40] sm:$0xff] %v1884_v47  ;;  %v1887_v50 = vadd.f32 %v1886_v49, %v1598_v48  ;;  %1809 = vmatmul.mubr.bf16.gmra.mrb[124].mxu1 %v1261_v44  ;;  %2098 = vmatmul.mubr.bf16.gmra.mrb[124].mxu0 %v1263_v46 }
 0x191   : > { %2115 = vst [vmem:[%s3469_s10 + $0x48] sm:$0xff] %v1887_v50 }
 0x192   : > { %v1602_v55 = vpop.f32.mrb[20].mxu1  ;;  %v1891_v28 = vpop.f32.mrb[20].mxu0 }
 0x193   : > { %v1603_v51 = vadd.f32 %v3447_v8, %v1602_v55  ;;  %v1604_v56 = vpop.f32.mrb[21].mxu1  ;;  %v1893_v57 = vpop.f32.mrb[21].mxu0 }
 0x194   : > { %v1605_v58 = vpop.f32.mrb[22].mxu1  ;;  %v1894_v61 = vpop.f32.mrb[22].mxu0 }
 0x195   : > { %v1892_v0 = vadd.f32 %v1891_v28, %v1603_v51  ;;  %v1606_v59 = vadd.f32 %v3447_v8, %v1605_v58  ;;  %v1607_v62 = vpop.f32.mrb[23].mxu1  ;;  %v1896_v1 = vpop.f32.mrb[23].mxu0 }
 0x197   : > { %2116 = vst [vmem:[%s3469_s10 + $0x50] sm:$0xff] %v1892_v0  ;;  %v1895_v2 = vadd.f32 %v1894_v61, %v1606_v59 }
 0x199   : > { %2117 = vst [vmem:[%s3469_s10 + $0x58] sm:$0xff] %v1895_v2 }
 0x19a   : > { %v1610_v3 = vpop.f32.mrb[24].mxu1  ;;  %v1899_v5 = vpop.f32.mrb[24].mxu0 }
 0x19b   : > { %v1611_v4 = vadd.f32 %v3447_v8, %v1610_v3  ;;  %v1612_v6 = vpop.f32.mrb[25].mxu1  ;;  %v1901_v7 = vpop.f32.mrb[25].mxu0 }
 0x19c   : > { %v1613_v30 = vpop.f32.mrb[26].mxu1  ;;  %v1902_v11 = vpop.f32.mrb[26].mxu0 }
 0x19d   : > { %v1900_v9 = vadd.f32 %v1899_v5, %v1611_v4  ;;  %v1614_v10 = vadd.f32 %v3447_v8, %v1613_v30  ;;  %v1615_v12 = vpop.f32.mrb[27].mxu1  ;;  %v1904_v31 = vpop.f32.mrb[27].mxu0 }
 0x19f   : > { %2118 = vst [vmem:[%s3469_s10 + $0x60] sm:$0xff] %v1900_v9  ;;  %v1903_v13 = vadd.f32 %v1902_v11, %v1614_v10 }
 0x1a1   : > { %2119 = vst [vmem:[%s3469_s10 + $0x68] sm:$0xff] %v1903_v13 }
 0x1a2   : > { %v1618_v14 = vpop.f32.mrb[28].mxu1  ;;  %v1907_v16 = vpop.f32.mrb[28].mxu0 }
 0x1a3   : > { %v1619_v15 = vadd.f32 %v3447_v8, %v1618_v14  ;;  %v1620_v17 = vpop.f32.mrb[29].mxu1  ;;  %v1909_v18 = vpop.f32.mrb[29].mxu0 }
 0x1a4   : > { %v1621_v19 = vpop.f32.mrb[30].mxu1  ;;  %v1910_v23 = vpop.f32.mrb[30].mxu0 }
 0x1a5   : > { %v1908_v53 = vadd.f32 %v1907_v16, %v1619_v15  ;;  %v1622_v20 = vadd.f32 %v3447_v8, %v1621_v19  ;;  %v1623_v24 = vpop.f32.mrb[31].mxu1  ;;  %v1912_v21 = vpop.f32.mrb[31].mxu0 }
 0x1a7   : > { %2120 = vst [vmem:[%s3469_s10 + $0x70] sm:$0xff] %v1908_v53  ;;  %v1911_v25 = vadd.f32 %v1910_v23, %v1622_v20 }
 0x1a9   : > { %2121 = vst [vmem:[%s3469_s10 + $0x78] sm:$0xff] %v1911_v25 }
 0x1aa   : > { %v1626_v54 = vpop.f32.mrb[32].mxu1  ;;  %v1915_v27 = vpop.f32.mrb[32].mxu0 }
 0x1ab   : > { %v1627_v22 = vadd.f32 %v3447_v8, %v1626_v54  ;;  %v1628_v29 = vpop.f32.mrb[33].mxu1  ;;  %v1917_v32 = vpop.f32.mrb[33].mxu0 }
 0x1ac   : > { %v1629_v33 = vpop.f32.mrb[34].mxu1  ;;  %v1918_v38 = vpop.f32.mrb[34].mxu0 }
 0x1ad   : > { %v1916_v34 = vadd.f32 %v1915_v27, %v1627_v22  ;;  %v1630_v37 = vadd.f32 %v3447_v8, %v1629_v33  ;;  %v1631_v60 = vpop.f32.mrb[35].mxu1  ;;  %v1920_v39 = vpop.f32.mrb[35].mxu0 }
 0x1af   : > { %2122 = vst [vmem:[%s3469_s10 + $0x80] sm:$0xff] %v1916_v34  ;;  %v1919_v40 = vadd.f32 %v1918_v38, %v1630_v37 }
 0x1b1   : > { %2123 = vst [vmem:[%s3469_s10 + $0x88] sm:$0xff] %v1919_v40 }
 0x1b2   : > { %v1634_v41 = vpop.f32.mrb[36].mxu1  ;;  %v1923_v35 = vpop.f32.mrb[36].mxu0 }
 0x1b3   : > { %v1635_v63 = vadd.f32 %v3447_v8, %v1634_v41  ;;  %v1636_v42 = vpop.f32.mrb[37].mxu1  ;;  %v1925_v43 = vpop.f32.mrb[37].mxu0 }
 0x1b4   : > { %v1637_v44 = vpop.f32.mrb[38].mxu1  ;;  %v1926_v46 = vpop.f32.mrb[38].mxu0 }
 0x1b5   : > { %v1924_v45 = vadd.f32 %v1923_v35, %v1635_v63  ;;  %v1638_v36 = vadd.f32 %v3447_v8, %v1637_v44  ;;  %v1639_v47 = vpop.f32.mrb[39].mxu1  ;;  %v1928_v48 = vpop.f32.mrb[39].mxu0 }
 0x1b7   : > { %2124 = vst [vmem:[%s3469_s10 + $0x90] sm:$0xff] %v1924_v45  ;;  %v1927_v49 = vadd.f32 %v1926_v46, %v1638_v36 }
 0x1b9   : > { %2125 = vst [vmem:[%s3469_s10 + $0x98] sm:$0xff] %v1927_v49 }
 0x1ba   : > { %v1642_v52 = vpop.f32.mrb[40].mxu1  ;;  %v1931_v50 = vpop.f32.mrb[40].mxu0 }
 0x1bb   : > { %v1643_v26 = vadd.f32 %v3447_v8, %v1642_v52  ;;  %v1644_v55 = vpop.f32.mrb[41].mxu1  ;;  %v1933_v51 = vpop.f32.mrb[41].mxu0 }
 0x1bc   : > { %v1645_v28 = vpop.f32.mrb[42].mxu1  ;;  %v1934_v58 = vpop.f32.mrb[42].mxu0 }
 0x1bd   : > { %v1932_v56 = vadd.f32 %v1931_v50, %v1643_v26  ;;  %v1646_v57 = vadd.f32 %v3447_v8, %v1645_v28  ;;  %v1647_v0 = vpop.f32.mrb[43].mxu1  ;;  %v1936_v59 = vpop.f32.mrb[43].mxu0 }
 0x1bf   : > { %2126 = vst [vmem:[%s3469_s10 + $0xa0] sm:$0xff] %v1932_v56  ;;  %v1935_v61 = vadd.f32 %v1934_v58, %v1646_v57 }
 0x1c1   : > { %2127 = vst [vmem:[%s3469_s10 + $0xa8] sm:$0xff] %v1935_v61 }
 0x1c2   : > { %v1650_v62 = vpop.f32.mrb[44].mxu1  ;;  %v1939_v2 = vpop.f32.mrb[44].mxu0 }
 0x1c3   : > { %v1651_v1 = vadd.f32 %v3447_v8, %v1650_v62  ;;  %v1652_v3 = vpop.f32.mrb[45].mxu1  ;;  %v1941_v4 = vpop.f32.mrb[45].mxu0 }
 0x1c4   : > { %v1653_v5 = vpop.f32.mrb[46].mxu1  ;;  %v1942_v30 = vpop.f32.mrb[46].mxu0 }
 0x1c5   : > { %v1940_v6 = vadd.f32 %v1939_v2, %v1651_v1  ;;  %v1654_v7 = vadd.f32 %v3447_v8, %v1653_v5  ;;  %v1655_v9 = vpop.f32.mrb[47].mxu1  ;;  %v1944_v10 = vpop.f32.mrb[47].mxu0 }
 0x1c7   : > { %2128 = vst [vmem:[%s3469_s10 + $0xb0] sm:$0xff] %v1940_v6  ;;  %v1943_v11 = vadd.f32 %v1942_v30, %v1654_v7 }
 0x1c9   : > { %2129 = vst [vmem:[%s3469_s10 + $0xb8] sm:$0xff] %v1943_v11 }
 0x1ca   : > { %v1658_v12 = vpop.f32.mrb[48].mxu1  ;;  %v1947_v13 = vpop.f32.mrb[48].mxu0 }
 0x1cb   : > { %v1659_v31 = vadd.f32 %v3447_v8, %v1658_v12  ;;  %v1660_v14 = vpop.f32.mrb[49].mxu1  ;;  %v1949_v15 = vpop.f32.mrb[49].mxu0 }
 0x1cc   : > { %v1661_v16 = vpop.f32.mrb[50].mxu1  ;;  %v1950_v19 = vpop.f32.mrb[50].mxu0 }
 0x1cd   : > { %v1948_v17 = vadd.f32 %v1947_v13, %v1659_v31  ;;  %v1662_v18 = vadd.f32 %v3447_v8, %v1661_v16  ;;  %v1663_v53 = vpop.f32.mrb[51].mxu1  ;;  %v1952_v20 = vpop.f32.mrb[51].mxu0 }
 0x1cf   : > { %2130 = vst [vmem:[%s3469_s10 + $0xc0] sm:$0xff] %v1948_v17  ;;  %v1951_v23 = vadd.f32 %v1950_v19, %v1662_v18 }
 0x1d1   : > { %2131 = vst [vmem:[%s3469_s10 + $0xc8] sm:$0xff] %v1951_v23 }
 0x1d2   : > { %v1666_v24 = vpop.f32.mrb[52].mxu1  ;;  %v1955_v25 = vpop.f32.mrb[52].mxu0 }
 0x1d3   : > { %v1667_v21 = vadd.f32 %v3447_v8, %v1666_v24  ;;  %v1668_v54 = vpop.f32.mrb[53].mxu1  ;;  %v1957_v22 = vpop.f32.mrb[53].mxu0 }
 0x1d4   : > { %v1669_v27 = vpop.f32.mrb[54].mxu1  ;;  %v1958_v33 = vpop.f32.mrb[54].mxu0 }
 0x1d5   : > { %v1956_v29 = vadd.f32 %v1955_v25, %v1667_v21  ;;  %v1670_v32 = vadd.f32 %v3447_v8, %v1669_v27  ;;  %v1671_v34 = vpop.f32.mrb[55].mxu1  ;;  %v1960_v37 = vpop.f32.mrb[55].mxu0 }
 0x1d7   : > { %2132 = vst [vmem:[%s3469_s10 + $0xd0] sm:$0xff] %v1956_v29  ;;  %v1959_v38 = vadd.f32 %v1958_v33, %v1670_v32 }
 0x1d9   : > { %2133 = vst [vmem:[%s3469_s10 + $0xd8] sm:$0xff] %v1959_v38 }
 0x1da   : > { %v1674_v60 = vpop.f32.mrb[56].mxu1  ;;  %v1963_v40 = vpop.f32.mrb[56].mxu0 }
 0x1db   : > { %v1675_v39 = vadd.f32 %v3447_v8, %v1674_v60  ;;  %v1676_v41 = vpop.f32.mrb[57].mxu1  ;;  %v1965_v63 = vpop.f32.mrb[57].mxu0 }
 0x1dc   : > { %v1677_v35 = vpop.f32.mrb[58].mxu1  ;;  %v1966_v44 = vpop.f32.mrb[58].mxu0 }
 0x1dd   : > { %v1964_v42 = vadd.f32 %v1963_v40, %v1675_v39  ;;  %v1678_v43 = vadd.f32 %v3447_v8, %v1677_v35  ;;  %v1679_v45 = vpop.f32.mrb[59].mxu1  ;;  %v1968_v36 = vpop.f32.mrb[59].mxu0 }
 0x1df   : > { %2134 = vst [vmem:[%s3469_s10 + $0xe0] sm:$0xff] %v1964_v42  ;;  %v1967_v46 = vadd.f32 %v1966_v44, %v1678_v43 }
 0x1e1   : > { %2135 = vst [vmem:[%s3469_s10 + $0xe8] sm:$0xff] %v1967_v46 }
 0x1e2   : > { %v1682_v47 = vpop.f32.mrb[60].mxu1  ;;  %v1971_v49 = vpop.f32.mrb[60].mxu0 }
 0x1e3   : > { %v1683_v48 = vadd.f32 %v3447_v8, %v1682_v47  ;;  %v1684_v52 = vpop.f32.mrb[61].mxu1  ;;  %v1973_v26 = vpop.f32.mrb[61].mxu0 }
 0x1e4   : > { %v1685_v50 = vpop.f32.mrb[62].mxu1  ;;  %v1974_v28 = vpop.f32.mrb[62].mxu0 }
 0x1e5   : > { %v1972_v55 = vadd.f32 %v1971_v49, %v1683_v48  ;;  %v1686_v51 = vadd.f32 %v3447_v8, %v1685_v50  ;;  %v1687_v56 = vpop.f32.mrb[63].mxu1  ;;  %v1976_v57 = vpop.f32.mrb[63].mxu0 }
 0x1e7   : > { %2136 = vst [vmem:[%s3469_s10 + $0xf0] sm:$0xff] %v1972_v55  ;;  %v1975_v58 = vadd.f32 %v1974_v28, %v1686_v51 }
 0x1e9   : > { %2137 = vst [vmem:[%s3469_s10 + $0xf8] sm:$0xff] %v1975_v58 }
 0x1ea   : > { %v1690_v0 = vpop.f32.mrb[64].mxu1  ;;  %v1979_v61 = vpop.f32.mrb[64].mxu0 }
 0x1eb   : > { %v1691_v59 = vadd.f32 %v3447_v8, %v1690_v0  ;;  %v1692_v62 = vpop.f32.mrb[65].mxu1  ;;  %v1981_v1 = vpop.f32.mrb[65].mxu0 }
 0x1ec   : > { %v1693_v2 = vpop.f32.mrb[66].mxu1  ;;  %v1982_v5 = vpop.f32.mrb[66].mxu0 }
 0x1ed   : > { %v1980_v3 = vadd.f32 %v1979_v61, %v1691_v59  ;;  %v1694_v4 = vadd.f32 %v3447_v8, %v1693_v2  ;;  %v1695_v6 = vpop.f32.mrb[67].mxu1  ;;  %v1984_v7 = vpop.f32.mrb[67].mxu0 }
 0x1ef   : > { %2138 = vst [vmem:[%s3469_s10 + $0x100] sm:$0xff] %v1980_v3  ;;  %v1983_v30 = vadd.f32 %v1982_v5, %v1694_v4 }
 0x1f1   : > { %2139 = vst [vmem:[%s3469_s10 + $0x108] sm:$0xff] %v1983_v30 }
 0x1f2   : > { %v1698_v9 = vpop.f32.mrb[68].mxu1  ;;  %v1987_v11 = vpop.f32.mrb[68].mxu0 }
 0x1f3   : > { %v1699_v10 = vadd.f32 %v3447_v8, %v1698_v9  ;;  %v1700_v12 = vpop.f32.mrb[69].mxu1  ;;  %v1989_v31 = vpop.f32.mrb[69].mxu0 }
 0x1f4   : > { %v1701_v13 = vpop.f32.mrb[70].mxu1  ;;  %v1990_v16 = vpop.f32.mrb[70].mxu0 }
 0x1f5   : > { %v1988_v14 = vadd.f32 %v1987_v11, %v1699_v10  ;;  %v1702_v15 = vadd.f32 %v3447_v8, %v1701_v13  ;;  %v1703_v17 = vpop.f32.mrb[71].mxu1  ;;  %v1992_v18 = vpop.f32.mrb[71].mxu0 }
 0x1f7   : > { %2140 = vst [vmem:[%s3469_s10 + $0x110] sm:$0xff] %v1988_v14  ;;  %v1991_v19 = vadd.f32 %v1990_v16, %v1702_v15 }
 0x1f9   : > { %2141 = vst [vmem:[%s3469_s10 + $0x118] sm:$0xff] %v1991_v19 }
 0x1fa   : > { %v1706_v53 = vpop.f32.mrb[72].mxu1  ;;  %v1995_v23 = vpop.f32.mrb[72].mxu0 }
 0x1fb   : > { %v1707_v20 = vadd.f32 %v3447_v8, %v1706_v53  ;;  %v1708_v24 = vpop.f32.mrb[73].mxu1  ;;  %v1997_v21 = vpop.f32.mrb[73].mxu0 }
 0x1fc   : > { %v1709_v25 = vpop.f32.mrb[74].mxu1  ;;  %v1998_v27 = vpop.f32.mrb[74].mxu0 }
 0x1fd   : > { %v1996_v54 = vadd.f32 %v1995_v23, %v1707_v20  ;;  %v1710_v22 = vadd.f32 %v3447_v8, %v1709_v25  ;;  %v1711_v29 = vpop.f32.mrb[75].mxu1  ;;  %v2000_v32 = vpop.f32.mrb[75].mxu0 }
 0x1ff   : > { %2142 = vst [vmem:[%s3469_s10 + $0x120] sm:$0xff] %v1996_v54  ;;  %v1999_v33 = vadd.f32 %v1998_v27, %v1710_v22 }
 0x201   : > { %2143 = vst [vmem:[%s3469_s10 + $0x128] sm:$0xff] %v1999_v33 }
 0x202   : > { %v1714_v34 = vpop.f32.mrb[76].mxu1  ;;  %v2003_v38 = vpop.f32.mrb[76].mxu0 }
 0x203   : > { %v1715_v37 = vadd.f32 %v3447_v8, %v1714_v34  ;;  %v1716_v60 = vpop.f32.mrb[77].mxu1  ;;  %v2005_v39 = vpop.f32.mrb[77].mxu0 }
 0x204   : > { %v1717_v40 = vpop.f32.mrb[78].mxu1  ;;  %v2006_v35 = vpop.f32.mrb[78].mxu0 }
 0x205   : > { %v2004_v41 = vadd.f32 %v2003_v38, %v1715_v37  ;;  %v1718_v63 = vadd.f32 %v3447_v8, %v1717_v40  ;;  %v1719_v42 = vpop.f32.mrb[79].mxu1  ;;  %v2008_v43 = vpop.f32.mrb[79].mxu0 }
 0x207   : > { %2144 = vst [vmem:[%s3469_s10 + $0x130] sm:$0xff] %v2004_v41  ;;  %v2007_v44 = vadd.f32 %v2006_v35, %v1718_v63 }
 0x209   : > { %2145 = vst [vmem:[%s3469_s10 + $0x138] sm:$0xff] %v2007_v44 }
 0x20a   : > { %v1722_v45 = vpop.f32.mrb[80].mxu1  ;;  %v2011_v46 = vpop.f32.mrb[80].mxu0 }
 0x20b   : > { %v1723_v36 = vadd.f32 %v3447_v8, %v1722_v45  ;;  %v1724_v47 = vpop.f32.mrb[81].mxu1  ;;  %v2013_v48 = vpop.f32.mrb[81].mxu0 }
 0x20c   : > { %v1725_v49 = vpop.f32.mrb[82].mxu1  ;;  %v2014_v50 = vpop.f32.mrb[82].mxu0 }
 0x20d   : > { %v2012_v52 = vadd.f32 %v2011_v46, %v1723_v36  ;;  %v1726_v26 = vadd.f32 %v3447_v8, %v1725_v49  ;;  %v1727_v55 = vpop.f32.mrb[83].mxu1  ;;  %v2016_v51 = vpop.f32.mrb[83].mxu0 }
 0x20f   : > { %2146 = vst [vmem:[%s3469_s10 + $0x140] sm:$0xff] %v2012_v52  ;;  %v2015_v28 = vadd.f32 %v2014_v50, %v1726_v26 }
 0x211   : > { %2147 = vst [vmem:[%s3469_s10 + $0x148] sm:$0xff] %v2015_v28 }
 0x212   : > { %v1730_v56 = vpop.f32.mrb[84].mxu1  ;;  %v2019_v58 = vpop.f32.mrb[84].mxu0 }
 0x213   : > { %v1731_v57 = vadd.f32 %v3447_v8, %v1730_v56  ;;  %v1732_v0 = vpop.f32.mrb[85].mxu1  ;;  %v2021_v59 = vpop.f32.mrb[85].mxu0 }
 0x214   : > { %v1733_v61 = vpop.f32.mrb[86].mxu1  ;;  %v2022_v2 = vpop.f32.mrb[86].mxu0 }
 0x215   : > { %v2020_v62 = vadd.f32 %v2019_v58, %v1731_v57  ;;  %v1734_v1 = vadd.f32 %v3447_v8, %v1733_v61  ;;  %v1735_v3 = vpop.f32.mrb[87].mxu1  ;;  %v2024_v4 = vpop.f32.mrb[87].mxu0 }
 0x217   : > { %2148 = vst [vmem:[%s3469_s10 + $0x150] sm:$0xff] %v2020_v62  ;;  %v2023_v5 = vadd.f32 %v2022_v2, %v1734_v1 }
 0x219   : > { %2149 = vst [vmem:[%s3469_s10 + $0x158] sm:$0xff] %v2023_v5 }
 0x21a   : > { %v1738_v6 = vpop.f32.mrb[88].mxu1  ;;  %v2027_v30 = vpop.f32.mrb[88].mxu0 }
 0x21b   : > { %v1739_v7 = vadd.f32 %v3447_v8, %v1738_v6  ;;  %v1740_v9 = vpop.f32.mrb[89].mxu1  ;;  %v2029_v10 = vpop.f32.mrb[89].mxu0 }
 0x21c   : > { %v1741_v11 = vpop.f32.mrb[90].mxu1  ;;  %v2030_v13 = vpop.f32.mrb[90].mxu0 }
 0x21d   : > { %v2028_v12 = vadd.f32 %v2027_v30, %v1739_v7  ;;  %v1742_v31 = vadd.f32 %v3447_v8, %v1741_v11  ;;  %v1743_v14 = vpop.f32.mrb[91].mxu1  ;;  %v2032_v15 = vpop.f32.mrb[91].mxu0 }
 0x21e   : > { %v2542_v15 = vld [vmem:[%s3691_s4] ss:$0 sm:$0xff] }
 0x21f   : > { %2150 = vst [vmem:[%s3469_s10 + $0x160] sm:$0xff] %v2028_v12  ;;  %v2031_v16 = vadd.f32 %v2030_v13, %v1742_v31 }
 0x221   : > { %2151 = vst [vmem:[%s3469_s10 + $0x168] sm:$0xff] %v2031_v16 }
 0x222   : > { %v1746_v17 = vpop.f32.mrb[92].mxu1  ;;  %v2035_v19 = vpop.f32.mrb[92].mxu0 }
 0x223   : > { %v1747_v18 = vadd.f32 %v3447_v8, %v1746_v17  ;;  %v1748_v53 = vpop.f32.mrb[93].mxu1  ;;  %v2037_v20 = vpop.f32.mrb[93].mxu0 }
 0x224   : > { %v1749_v23 = vpop.f32.mrb[94].mxu1  ;;  %v2038_v25 = vpop.f32.mrb[94].mxu0 }
 0x225   : > { %v2036_v24 = vadd.f32 %v2035_v19, %v1747_v18  ;;  %v1750_v21 = vadd.f32 %v3447_v8, %v1749_v23  ;;  %v1751_v54 = vpop.f32.mrb[95].mxu1  ;;  %v2040_v22 = vpop.f32.mrb[95].mxu0 }
 0x227   : > { %2152 = vst [vmem:[%s3469_s10 + $0x170] sm:$0xff] %v2036_v24  ;;  %v2039_v27 = vadd.f32 %v2038_v25, %v1750_v21 }
 0x229   : > { %2153 = vst [vmem:[%s3469_s10 + $0x178] sm:$0xff] %v2039_v27 }
 0x22a   : > { %v1754_v29 = vpop.f32.mrb[96].mxu1  ;;  %v2043_v33 = vpop.f32.mrb[96].mxu0 }
 0x22b   : > { %v1755_v32 = vadd.f32 %v3447_v8, %v1754_v29  ;;  %v1756_v34 = vpop.f32.mrb[97].mxu1  ;;  %v2045_v37 = vpop.f32.mrb[97].mxu0 }
 0x22c   : > { %v1757_v38 = vpop.f32.mrb[98].mxu1  ;;  %v2046_v40 = vpop.f32.mrb[98].mxu0 }
 0x22d   : > { %v2044_v60 = vadd.f32 %v2043_v33, %v1755_v32  ;;  %v1758_v39 = vadd.f32 %v3447_v8, %v1757_v38  ;;  %v1759_v41 = vpop.f32.mrb[99].mxu1  ;;  %v2048_v63 = vpop.f32.mrb[99].mxu0 }
 0x22f   : > { %2154 = vst [vmem:[%s3469_s10 + $0x180] sm:$0xff] %v2044_v60  ;;  %v2047_v35 = vadd.f32 %v2046_v40, %v1758_v39 }
 0x231   : > { %2155 = vst [vmem:[%s3469_s10 + $0x188] sm:$0xff] %v2047_v35 }
 0x232   : > { %v1762_v42 = vpop.f32.mrb[100].mxu1  ;;  %v2051_v44 = vpop.f32.mrb[100].mxu0 }
 0x233   : > { %v1763_v43 = vadd.f32 %v3447_v8, %v1762_v42  ;;  %v1764_v45 = vpop.f32.mrb[101].mxu1  ;;  %v2053_v36 = vpop.f32.mrb[101].mxu0 }
 0x234   : > { %v1765_v46 = vpop.f32.mrb[102].mxu1  ;;  %v2054_v49 = vpop.f32.mrb[102].mxu0 }
 0x235   : > { %v2052_v47 = vadd.f32 %v2051_v44, %v1763_v43  ;;  %v1766_v48 = vadd.f32 %v3447_v8, %v1765_v46  ;;  %v1767_v52 = vpop.f32.mrb[103].mxu1  ;;  %v2056_v26 = vpop.f32.mrb[103].mxu0 }
 0x237   : > { %2156 = vst [vmem:[%s3469_s10 + $0x190] sm:$0xff] %v2052_v47  ;;  %v2055_v50 = vadd.f32 %v2054_v49, %v1766_v48 }
 0x239   : > { %2157 = vst [vmem:[%s3469_s10 + $0x198] sm:$0xff] %v2055_v50 }
 0x23a   : > { %v1770_v55 = vpop.f32.mrb[104].mxu1  ;;  %v2059_v28 = vpop.f32.mrb[104].mxu0 }
 0x23b   : > { %v1771_v51 = vadd.f32 %v3447_v8, %v1770_v55  ;;  %v1772_v56 = vpop.f32.mrb[105].mxu1  ;;  %v2061_v57 = vpop.f32.mrb[105].mxu0 }
 0x23c   : > { %v1773_v58 = vpop.f32.mrb[106].mxu1  ;;  %v2062_v61 = vpop.f32.mrb[106].mxu0 }
 0x23d   : > { %v2060_v0 = vadd.f32 %v2059_v28, %v1771_v51  ;;  %v1774_v59 = vadd.f32 %v3447_v8, %v1773_v58  ;;  %v1775_v62 = vpop.f32.mrb[107].mxu1  ;;  %v2064_v1 = vpop.f32.mrb[107].mxu0 }
 0x23f   : > { %2158 = vst [vmem:[%s3469_s10 + $0x1a0] sm:$0xff] %v2060_v0  ;;  %v2063_v2 = vadd.f32 %v2062_v61, %v1774_v59 }
 0x241   : > { %2159 = vst [vmem:[%s3469_s10 + $0x1a8] sm:$0xff] %v2063_v2 }
 0x242   : > { %v1778_v3 = vpop.f32.mrb[108].mxu1  ;;  %v2067_v5 = vpop.f32.mrb[108].mxu0 }
 0x243   : > { %v1779_v4 = vadd.f32 %v3447_v8, %v1778_v3  ;;  %v1780_v6 = vpop.f32.mrb[109].mxu1  ;;  %v2069_v7 = vpop.f32.mrb[109].mxu0 }
 0x244   : > { %v1781_v30 = vpop.f32.mrb[110].mxu1  ;;  %v2070_v11 = vpop.f32.mrb[110].mxu0 }
 0x245   : > { %v2068_v9 = vadd.f32 %v2067_v5, %v1779_v4  ;;  %v1782_v10 = vadd.f32 %v3447_v8, %v1781_v30  ;;  %v1783_v12 = vpop.f32.mrb[111].mxu1  ;;  %v2072_v31 = vpop.f32.mrb[111].mxu0 }
 0x247   : > { %2160 = vst [vmem:[%s3469_s10 + $0x1b0] sm:$0xff] %v2068_v9  ;;  %v2071_v13 = vadd.f32 %v2070_v11, %v1782_v10 }
 0x249   : > { %2161 = vst [vmem:[%s3469_s10 + $0x1b8] sm:$0xff] %v2071_v13 }
 0x24a   : > { %v1786_v14 = vpop.f32.mrb[112].mxu1  ;;  %v2075_v17 = vpop.f32.mrb[112].mxu0 }
 0x24b   : > { %v1787_v16 = vadd.f32 %v2542_v15, %v1786_v14  ;;  %v1788_v18 = vpop.f32.mrb[113].mxu1  ;;  %v2077_v19 = vpop.f32.mrb[113].mxu0 }
 0x24c   : > { %v1789_v53 = vpop.f32.mrb[114].mxu1  ;;  %v2078_v23 = vpop.f32.mrb[114].mxu0 }
 0x24d   : > { %v2076_v20 = vadd.f32 %v2075_v17, %v1787_v16  ;;  %v1790_v8 = vadd.f32 %v2542_v15, %v1789_v53  ;;  %v1791_v24 = vpop.f32.mrb[115].mxu1  ;;  %v2080_v21 = vpop.f32.mrb[115].mxu0 }
 0x24f   : > { %2162 = vst [vmem:[%s3469_s10 + $0x1c0] sm:$0xff] %v2076_v20  ;;  %v2079_v25 = vadd.f32 %v2078_v23, %v1790_v8 }
 0x251   : > { %2163 = vst [vmem:[%s3469_s10 + $0x1c8] sm:$0xff] %v2079_v25 }
 0x252   : > { %v1794_v54 = vpop.f32.mrb[116].mxu1  ;;  %v2083_v27 = vpop.f32.mrb[116].mxu0 }
 0x253   : > { %v1795_v22 = vadd.f32 %v2542_v15, %v1794_v54  ;;  %v1796_v29 = vpop.f32.mrb[117].mxu1  ;;  %v2085_v32 = vpop.f32.mrb[117].mxu0 }
 0x254   : > { %v1797_v33 = vpop.f32.mrb[118].mxu1  ;;  %v2086_v38 = vpop.f32.mrb[118].mxu0 }
 0x255   : > { %v2084_v34 = vadd.f32 %v2083_v27, %v1795_v22  ;;  %v1798_v37 = vadd.f32 %v2542_v15, %v1797_v33  ;;  %v1799_v60 = vpop.f32.mrb[119].mxu1  ;;  %v2088_v39 = vpop.f32.mrb[119].mxu0 }
 0x257   : > { %2164 = vst [vmem:[%s3469_s10 + $0x1d0] sm:$0xff] %v2084_v34  ;;  %v2087_v40 = vadd.f32 %v2086_v38, %v1798_v37 }
 0x259   : > { %2165 = vst [vmem:[%s3469_s10 + $0x1d8] sm:$0xff] %v2087_v40 }
 0x25a   : > { %v1802_v41 = vpop.f32.mrb[120].mxu1  ;;  %v2091_v35 = vpop.f32.mrb[120].mxu0 }
 0x25b   : > { %v1803_v63 = vadd.f32 %v2542_v15, %v1802_v41  ;;  %v1804_v42 = vpop.f32.mrb[121].mxu1  ;;  %v2093_v43 = vpop.f32.mrb[121].mxu0 }
 0x25c   : > { %v1805_v44 = vpop.f32.mrb[122].mxu1  ;;  %v2094_v46 = vpop.f32.mrb[122].mxu0 }
 0x25d   : > { %v2092_v45 = vadd.f32 %v2091_v35, %v1803_v63  ;;  %v1806_v36 = vadd.f32 %v2542_v15, %v1805_v44  ;;  %v1807_v47 = vpop.f32.mrb[123].mxu1  ;;  %v2096_v48 = vpop.f32.mrb[123].mxu0 }
 0x25f   : > { %2166 = vst [vmem:[%s3469_s10 + $0x1e0] sm:$0xff] %v2092_v45  ;;  %v2095_v49 = vadd.f32 %v2094_v46, %v1806_v36 }
 0x261   : > { %2167 = vst [vmem:[%s3469_s10 + $0x1e8] sm:$0xff] %v2095_v49 }
 0x262   : > { %v1810_v52 = vpop.f32.mrb[124].mxu1  ;;  %v2099_v50 = vpop.f32.mrb[124].mxu0 }
 0x263   : > { %v1811_v26 = vadd.f32 %v2542_v15, %v1810_v52  ;;  %v1812_v55 = vpop.f32.mrb[125].mxu1  ;;  %v2101_v51 = vpop.f32.mrb[125].mxu0 }
 0x264   : > { %v1813_v28 = vpop.f32.mrb[126].mxu1  ;;  %v2102_v58 = vpop.f32.mrb[126].mxu0 }
 0x265   : > { %v2100_v56 = vadd.f32 %v2099_v50, %v1811_v26  ;;  %v1814_v57 = vadd.f32 %v2542_v15, %v1813_v28  ;;  %v1815_v0 = vpop.f32.mrb[127].mxu1  ;;  %v2104_v59 = vpop.f32.mrb[127].mxu0 }
 0x267   : > { %2168 = vst [vmem:[%s3469_s10 + $0x1f0] sm:$0xff] %v2100_v56  ;;  %v2103_v61 = vadd.f32 %v2102_v58, %v1814_v57 }
 0x269   : > { %2169 = vst [vmem:[%s3469_s10 + $0x1f8] sm:$0xff] %v2103_v61 }
 0x26a   : > { %2614 = shalt.err (!%p2611_p7)
}
 0x26b   : > { %s2615_s6 = scalar_lea.hbm %s3640_s11, 8192  ;;  %s2619_s10 = scalar_lea.hbm %s3692_s5, 32768 }
 0x26c   : > { %p2616_p9 = scmp.ne.s32.totalorder %s3640_s11, %s2615_s6  ;;  %p2620_p5 = scmp.lt.u32.totalorder %s3640_s11, %s3692_s5 }
 0x26d   : > { %p2621_p10 = scmp.lt.u32.totalorder %s2619_s10, %s2615_s6  ;;  %p2623_p1 = scmp.lt.u32.totalorder %s2615_s6, %s3640_s11 }
 0x26e   : > { %p2617_p11 = pnand %p2616_p9, %p2796_p12 }
 0x26f   : > { %p2622_p2 = por %p2621_p10, %p2620_p5 }
 0x270   : > { %p2618_p0 = pneg %p2617_p11 }
 0x271   : > { %p2624_p4 = por %p2623_p1, %p2622_p2 }
 0x273   : > { %p2625_p6 = pnand %p2624_p4, %p2618_p0 }
 0x275   : > { %2628 = shalt.err (!%p2625_p6)
}
 0x276   : > { %s2681_s28 = smov 128   ;;  %s2682_s17 = smov 8  }
 0x277   : > { %2452 = dma.vmem_to_hbm [thread:$0]  (%p2796_p12), %s3642_s16, 8192, %s3640_s11, %s2171_s22, %s2681_s28, %s2681_s28, %s2682_s17  }
 0x278 PF: > { %p2469_p8 = scmp.ge.s32.totalorder %s2671_s21, 2  ;;  %s2199_s27 = sand.u32 1, %s2659_s18  }
 0x279   : > { %p3707_p13 = scmp.ne.s32.totalorder %s3697_s25, 0  ;;  %s2200_s12 = scalar_lea.sflag [#allocation4], %s2199_s27 }
 0x27b   : > { %p2463_p3 = pnand %p2469_p8, %p3707_p13 }
 0x27d   : > { %2654 = dma.done.wait (!%p2463_p3), %s2200_s12, 8192  }
 0x27e   : > { %2656 = vsyncadd (!%p2463_p3), %s2200_s12, 4294959104  ;;  %p19_p7 = scmp.ge.s32.totalorder %s2766_s30, 6   ;;  %s3708_s18 = smov %s2663_s19 }
 0x27f   : > { %s3709_s19 = smov %s2667_s20  ;;  %s3710_s20 = smov %s2792_s8 }
 0x280   : > { %s3711_s21 = smov %s2766_s30  ;;  %21 = sbr.rel (!%p19_p7) target bundleno = 6 (0x6), region = 89 }
 0x287   :  { %2205 = vsyncpa [#allocation3], 1 }
 0x288   :  { %2207 = vsyncpa [#allocation3 + $0x1], 1 }
 0x289   :  { %2208 = vsyncpa [#allocation6], 1 }
 0x28a   :  { %2209 = vsyncpa [#allocation4], 1 }
 0x28b   :  { %2211 = vsyncpa [#allocation4 + $0x1], 1 }

</bundles_post_ra>
